<compile_context>
chip_gen: v5e
topology: v5e:2x2
jax: 0.10.0
libtpu: 0.0.40
codegen_flags: <defaults>
</compile_context>

<pallas_src>
import functools

import jax
import jax.numpy as jnp
from jax.experimental import pallas as pl
from jax.experimental.pallas import tpu as pltpu


def _three_unit_kernel(p_ref, mask_ref, w1_ref, b1_ref, w2_ref, b2_ref,
                       out_ref, r_ref, *, Wp, hw, Mb, C, r_slack):
    """One grid step = `nb` batch elements packed along the lane axis.

    p_ref   : (C, Mb + p_slack) zero-padded input, channel-major, flat
              (elem, Dp, Hp, Wp) minor layout + trailing zero slack
    mask_ref: (1, Mb)    1.0 at valid intermediate positions (d<D, 1<=h<=H, 1<=w<=W)
    w1_ref  : (12, C, C) stage-1 tap weights [9 spatial | 3 spectral], each (c_out, c_in)
    b1_ref  : (C, 1)     bsp1 + bspec
    w2_ref  : (9, C, C)  stage-2 spatial tap weights
    b2_ref  : (C, 1)
    out_ref : (C, Mb)
    r_ref   : (C, Mb + r_slack) masked ReLU intermediate (+ zeroed lane slack)
    """
    # Zero the scratch slack so stage 2 never reads stale VMEM (deterministic output).
    r_ref[:, Mb:] = jnp.zeros((C, r_slack), jnp.float32)

    # ---- stage 1: spatial(1,3,3) + spectral(3,1,1), direct per-tap accumulation ----
    # output coord o = d*hw + (h+1)*Wp + (w+1) (padded coords); tap t reads p[o + s_t]
    shifts1 = ([hw + (dy - 1) * Wp + (dx - 1) for dy in range(3) for dx in range(3)]
               + [dd * hw for dd in range(3)])
    acc = None
    for t, s in enumerate(shifts1):
        part = jnp.dot(w1_ref[t], p_ref[:, s:s + Mb],
                       preferred_element_type=jnp.float32)
        acc = part if acc is None else acc + part
    # ReLU + fused bias + zero the halo / inter-element garbage.
    r_ref[:, :Mb] = jnp.maximum(acc + b1_ref[...], 0.0) * mask_ref[...]

    # ---- stage 2: second spatial (1,3,3) conv, direct per-tap accumulation ---------
    # output coord o2 = d*hw + h*Wp + w; tap (dy,dx) reads r[o2 + dy*Wp + dx]
    shifts2 = [dy * Wp + dx for dy in range(3) for dx in range(3)]
    acc2 = None
    for t, s in enumerate(shifts2):
        part = jnp.dot(w2_ref[t], r_ref[:, s:s + Mb],
                       preferred_element_type=jnp.float32)
        acc2 = part if acc2 is None else acc2 + part
    out_ref[...] = (acc2 + b2_ref[...]).astype(out_ref.dtype)


def three_unit(x_ncdhw, wsp1, bsp1, wspec, bspec, wsp2, bsp2):
    """x: (N, C, D, H, W) f32.  Effective (weight-normed) weights:
       wsp1/wsp2: (3, 3, C_in, C_out), wspec: (3, C_in, C_out), biases: (1, C)."""
    # TODO(synk): for trained checkpoints fold weight-norm g * v/||v|| into wsp*/wspec here.
    N, C, D, H, W = x_ncdhw.shape
    Dp, Hp, Wp = D + 2, H + 2, W + 2
    hw = Hp * Wp
    E = Dp * hw                                   # flat padded length of one element

    # Pack `nb` batch elements along the lane axis per grid step: amortizes the fixed
    # per-step cost and widens the matmul RHS.  Budget keeps the per-step footprint
    # (double-buffered in/out + scratch) well inside v7x's 32 MiB default scoped VMEM.
    lane_budget = max(512, (8 << 20) // (C * 4 * 6))
    nb = min(N, max(1, lane_budget // E))
    num_blocks = -(-N // nb)                      # cdiv
    n_pad = num_blocks * nb
    # TODO(synk): on v7x (2 TensorCores) add a second parallel axis when num_blocks < 2.

    Mb = ((nb * E + 127) // 128) * 128            # lane-dense block width
    p_slack = ((2 * hw + 127) // 128) * 128       # >= max stage-1 tap shift (2*hw)
    r_slack = ((2 * Wp + 2 + 127) // 128) * 128   # >= max stage-2 tap shift
    src_w = Mb + p_slack

    # One halo pad, then channel-major re-layout with batch on the lane axis, then one
    # slack pad of the flat slab (XLA fuses the re-layout into the pad copies).
    xp = jnp.pad(x_ncdhw.astype(jnp.float32),
                 ((0, n_pad - N), (0, 0), (1, 1), (1, 1), (1, 1)))
    xp = xp.reshape(num_blocks, nb, C, E).transpose(0, 2, 1, 3)
    p = jnp.pad(xp.reshape(num_blocks, C, nb * E),
                ((0, 0), (0, 0), (0, src_w - nb * E)))

    # Mask of valid intermediate positions (zeros conv garbage in halos / between elems).
    mask_e = jnp.zeros((Dp, Hp, Wp), jnp.float32).at[:D, 1:H + 1, 1:W + 1].set(1.0)
    mask = jnp.pad(jnp.tile(mask_e.reshape(E), nb), (0, Mb - nb * E)).reshape(1, Mb)

    # Per-tap weight stacks, (tap, c_out, c_in); taps = 9 spatial then 3 spectral.
    w1 = jnp.concatenate([jnp.transpose(wsp1, (0, 1, 3, 2)).reshape(9, C, C),
                          jnp.transpose(wspec, (0, 2, 1))], axis=0)      # (12, C, C)
    b1 = (bsp1 + bspec).reshape(C, 1)
    w2 = jnp.transpose(wsp2, (0, 1, 3, 2)).reshape(9, C, C)              # (9, C, C)
    b2 = bsp2.reshape(C, 1)

    kernel = functools.partial(_three_unit_kernel, Wp=Wp, hw=hw, Mb=Mb, C=C,
                               r_slack=r_slack)
    out = pl.pallas_call(
        kernel,
        out_shape=jax.ShapeDtypeStruct((num_blocks, C, Mb), jnp.float32),
        grid=(num_blocks,),
        in_specs=[
            pl.BlockSpec((None, C, src_w), lambda n: (n, 0, 0)),   # padded input slab
            pl.BlockSpec((1, Mb), lambda n: (0, 0)),               # halo mask
            pl.BlockSpec((12, C, C), lambda n: (0, 0, 0)),         # stage-1 tap weights
            pl.BlockSpec((C, 1), lambda n: (0, 0)),                # stage-1 bias
            pl.BlockSpec((9, C, C), lambda n: (0, 0, 0)),          # stage-2 tap weights
            pl.BlockSpec((C, 1), lambda n: (0, 0)),                # stage-2 bias
        ],
        out_specs=pl.BlockSpec((None, C, Mb), lambda n: (n, 0, 0)),
        scratch_shapes=[
            pltpu.VMEM((C, Mb + r_slack), jnp.float32),            # ReLU intermediate
        ],
        compiler_params=pltpu.CompilerParams(
            dimension_semantics=("parallel",)),                    # pipeline over blocks
    )(p, mask, w1, b1, w2, b2)

    # Unpack (blocks, C, Mb) -> (N, C, D, H, W); lanes beyond nb*E and padded halo
    # positions hold conv-of-padding garbage by design and are sliced away here.
    out = out[:, :, :nb * E].reshape(num_blocks, C, nb, E).transpose(0, 2, 1, 3)
    out = out.reshape(n_pad, C, Dp, Hp, Wp)[:N, :, :D, :H, :W]
    return out


def conv3d_ref(x_ncdhw, w, b, mode, C):
    """XLA reference conv, PyTorch NCDHW / OIDHW semantics."""
    if mode == "spatial":                     # w: (kh, kw, cin, cout)
        w_oidhw = jnp.transpose(w, (3, 2, 0, 1))[:, :, None, :, :]
        pad = [(0, 0), (1, 1), (1, 1)]
    else:                                     # w: (kd, cin, cout)
        w_oidhw = jnp.transpose(w, (2, 1, 0))[:, :, :, None, None]
        pad = [(1, 1), (0, 0), (0, 0)]
    y = jax.lax.conv_general_dilated(
        x_ncdhw, w_oidhw, window_strides=(1, 1, 1), padding=pad,
        dimension_numbers=("NCDHW", "OIDHW", "NCDHW"))
    return y + b.reshape(1, C, 1, 1, 1)


if __name__ == "__main__":
    N, C, D, H, W = 2, 8, 4, 8, 8   # n_feats = C = 8
    keys = jax.random.split(jax.random.PRNGKey(0), 7)

    x = jax.random.normal(keys[0], (N, C, D, H, W), jnp.float32)

    # Deterministic synthetic parameters (effective weight-normed weights).
    wsp1 = jax.random.normal(keys[1], (3, 3, C, C), jnp.float32) * 0.1   # spatial
    bsp1 = jax.random.normal(keys[2], (1, C), jnp.float32) * 0.1
    wspec = jax.random.normal(keys[3], (3, C, C), jnp.float32) * 0.1     # spectral
    bspec = jax.random.normal(keys[4], (1, C), jnp.float32) * 0.1
    wsp2 = jax.random.normal(keys[5], (3, 3, C, C), jnp.float32) * 0.1   # spatial_one
    bsp2 = jax.random.normal(keys[6], (1, C), jnp.float32) * 0.1

    out = three_unit(x, wsp1, bsp1, wspec, bspec, wsp2, bsp2)
    jax.block_until_ready(out)

    # Pure-XLA reference of the PyTorch forward pass.
    ref = (conv3d_ref(x, wsp1, bsp1, "spatial", C)
           + conv3d_ref(x, wspec, bspec, "spectral", C))
    ref = jnp.maximum(ref, 0.0)
    ref = conv3d_ref(ref, wsp2, bsp2, "spatial", C)

    assert out.shape == (N, C, D, H, W)
    assert jnp.allclose(out, ref, atol=1e-3, rtol=1e-3), "mismatch vs reference"
    print("KERNEL_OK")
</pallas_src>

<mosaic_0001>
module attributes {stable_mosaic.version = 11 : i64} {
  func.func @_three_unit_kernel(%arg0: i32, %arg1: memref<1x8x1536xf32, #tpu.memory_space<vmem>>, %arg2: memref<1x1280xf32, #tpu.memory_space<vmem>>, %arg3: memref<12x8x8xf32, #tpu.memory_space<vmem>>, %arg4: memref<8x1xf32, #tpu.memory_space<vmem>>, %arg5: memref<9x8x8xf32, #tpu.memory_space<vmem>>, %arg6: memref<8x1xf32, #tpu.memory_space<vmem>>, %arg7: memref<1x8x1280xf32, #tpu.memory_space<vmem>>, %arg8: memref<8x1408xf32, #tpu.memory_space<vmem>>) attributes {dimension_semantics = [#tpu.dimension_semantics<parallel>], iteration_bounds = array<i64: 1>, scalar_prefetch = 0 : i64, scratch_operands = 1 : i64, tpu.core_type = #tpu.core_type<tc>, window_params = [{transform_indices = @transform_0, window_bounds = array<i64: 1, 8, 1536>}, {pipeline_mode = #tpu.pipeline_mode<synchronous>, transform_indices = @transform_1, window_bounds = array<i64: 1, 1280>}, {pipeline_mode = #tpu.pipeline_mode<synchronous>, transform_indices = @transform_2, window_bounds = array<i64: 12, 8, 8>}, {pipeline_mode = #tpu.pipeline_mode<synchronous>, transform_indices = @transform_3, window_bounds = array<i64: 8, 1>}, {pipeline_mode = #tpu.pipeline_mode<synchronous>, transform_indices = @transform_4, window_bounds = array<i64: 9, 8, 8>}, {pipeline_mode = #tpu.pipeline_mode<synchronous>, transform_indices = @transform_5, window_bounds = array<i64: 8, 1>}, {transform_indices = @transform_6, window_bounds = array<i64: 1, 8, 1280>}]} {
    %cst = arith.constant 0.000000e+00 : f32
    %0 = vector.broadcast %cst : f32 to vector<8x128xf32>
    %c0 = arith.constant 0 : index
    %c1280 = arith.constant 1280 : index
    %1 = vector.load %arg8[%c0, %c1280] : memref<8x1408xf32, #tpu.memory_space<vmem>>, vector<8x128xf32>
    tpu.vector_store %arg8[%c0, %c1280], %0 {strides = array<i32>} : memref<8x1408xf32, #tpu.memory_space<vmem>>, vector<8x128xf32>,
    %c0_0 = arith.constant 0 : index
    %c0_1 = arith.constant 0 : index
    %c0_2 = arith.constant 0 : index
    %2 = vector.load %arg3[%c0_0, %c0_1, %c0_2] : memref<12x8x8xf32, #tpu.memory_space<vmem>>, vector<1x8x8xf32>
    %3 = vector.shape_cast %2 : vector<1x8x8xf32> to vector<8x8xf32>
    %c0_3 = arith.constant 0 : index
    %c0_4 = arith.constant 0 : index
    %c89 = arith.constant 89 : index
    %4 = vector.load %arg1[%c0_3, %c0_4, %c89] : memref<1x8x1536xf32, #tpu.memory_space<vmem>>, vector<1x8x1280xf32>
    %5 = vector.shape_cast %4 : vector<1x8x1280xf32> to vector<8x1280xf32>
    %cst_5 = arith.constant dense<0.000000e+00> : vector<8x1280xf32>
    %6 = tpu.matmul %3, %5, %cst_5 {dimension_numbers = #tpu.dot_dimension_numbers<[1], [0], [0], [1], [0, 0, 1, 1], [], []>} : vector<8x8xf32>, vector<8x1280xf32>, vector<8x1280xf32> -> vector<8x1280xf32>
    %c1 = arith.constant 1 : index
    %c0_6 = arith.constant 0 : index
    %c0_7 = arith.constant 0 : index
    %7 = vector.load %arg3[%c1, %c0_6, %c0_7] : memref<12x8x8xf32, #tpu.memory_space<vmem>>, vector<1x8x8xf32>
    %8 = vector.shape_cast %7 : vector<1x8x8xf32> to vector<8x8xf32>
    %c0_8 = arith.constant 0 : index
    %c0_9 = arith.constant 0 : index
    %c90 = arith.constant 90 : index
    %9 = vector.load %arg1[%c0_8, %c0_9, %c90] : memref<1x8x1536xf32, #tpu.memory_space<vmem>>, vector<1x8x1280xf32>
    %10 = vector.shape_cast %9 : vector<1x8x1280xf32> to vector<8x1280xf32>
    %cst_10 = arith.constant dense<0.000000e+00> : vector<8x1280xf32>
    %11 = tpu.matmul %8, %10, %cst_10 {dimension_numbers = #tpu.dot_dimension_numbers<[1], [0], [0], [1], [0, 0, 1, 1], [], []>} : vector<8x8xf32>, vector<8x1280xf32>, vector<8x1280xf32> -> vector<8x1280xf32>
    %12 = arith.addf %6, %11 : vector<8x1280xf32>
    %c2 = arith.constant 2 : index
    %c0_11 = arith.constant 0 : index
    %c0_12 = arith.constant 0 : index
    %13 = vector.load %arg3[%c2, %c0_11, %c0_12] : memref<12x8x8xf32, #tpu.memory_space<vmem>>, vector<1x8x8xf32>
    %14 = vector.shape_cast %13 : vector<1x8x8xf32> to vector<8x8xf32>
    %c0_13 = arith.constant 0 : index
    %c0_14 = arith.constant 0 : index
    %c91 = arith.constant 91 : index
    %15 = vector.load %arg1[%c0_13, %c0_14, %c91] : memref<1x8x1536xf32, #tpu.memory_space<vmem>>, vector<1x8x1280xf32>
    %16 = vector.shape_cast %15 : vector<1x8x1280xf32> to vector<8x1280xf32>
    %cst_15 = arith.constant dense<0.000000e+00> : vector<8x1280xf32>
    %17 = tpu.matmul %14, %16, %cst_15 {dimension_numbers = #tpu.dot_dimension_numbers<[1], [0], [0], [1], [0, 0, 1, 1], [], []>} : vector<8x8xf32>, vector<8x1280xf32>, vector<8x1280xf32> -> vector<8x1280xf32>
    %18 = arith.addf %12, %17 : vector<8x1280xf32>
    %c3 = arith.constant 3 : index
    %c0_16 = arith.constant 0 : index
    %c0_17 = arith.constant 0 : index
    %19 = vector.load %arg3[%c3, %c0_16, %c0_17] : memref<12x8x8xf32, #tpu.memory_space<vmem>>, vector<1x8x8xf32>
    %20 = vector.shape_cast %19 : vector<1x8x8xf32> to vector<8x8xf32>
    %c0_18 = arith.constant 0 : index
    %c0_19 = arith.constant 0 : index
    %c99 = arith.constant 99 : index
    %21 = vector.load %arg1[%c0_18, %c0_19, %c99] : memref<1x8x1536xf32, #tpu.memory_space<vmem>>, vector<1x8x1280xf32>
    %22 = vector.shape_cast %21 : vector<1x8x1280xf32> to vector<8x1280xf32>
    %cst_20 = arith.constant dense<0.000000e+00> : vector<8x1280xf32>
    %23 = tpu.matmul %20, %22, %cst_20 {dimension_numbers = #tpu.dot_dimension_numbers<[1], [0], [0], [1], [0, 0, 1, 1], [], []>} : vector<8x8xf32>, vector<8x1280xf32>, vector<8x1280xf32> -> vector<8x1280xf32>
    %24 = arith.addf %18, %23 : vector<8x1280xf32>
    %c4 = arith.constant 4 : index
    %c0_21 = arith.constant 0 : index
    %c0_22 = arith.constant 0 : index
    %25 = vector.load %arg3[%c4, %c0_21, %c0_22] : memref<12x8x8xf32, #tpu.memory_space<vmem>>, vector<1x8x8xf32>
    %26 = vector.shape_cast %25 : vector<1x8x8xf32> to vector<8x8xf32>
    %c0_23 = arith.constant 0 : index
    %c0_24 = arith.constant 0 : index
    %c100 = arith.constant 100 : index
    %27 = vector.load %arg1[%c0_23, %c0_24, %c100] : memref<1x8x1536xf32, #tpu.memory_space<vmem>>, vector<1x8x1280xf32>
    %28 = vector.shape_cast %27 : vector<1x8x1280xf32> to vector<8x1280xf32>
    %cst_25 = arith.constant dense<0.000000e+00> : vector<8x1280xf32>
    %29 = tpu.matmul %26, %28, %cst_25 {dimension_numbers = #tpu.dot_dimension_numbers<[1], [0], [0], [1], [0, 0, 1, 1], [], []>} : vector<8x8xf32>, vector<8x1280xf32>, vector<8x1280xf32> -> vector<8x1280xf32>
    %30 = arith.addf %24, %29 : vector<8x1280xf32>
    %c5 = arith.constant 5 : index
    %c0_26 = arith.constant 0 : index
    %c0_27 = arith.constant 0 : index
    %31 = vector.load %arg3[%c5, %c0_26, %c0_27] : memref<12x8x8xf32, #tpu.memory_space<vmem>>, vector<1x8x8xf32>
    %32 = vector.shape_cast %31 : vector<1x8x8xf32> to vector<8x8xf32>
    %c0_28 = arith.constant 0 : index
    %c0_29 = arith.constant 0 : index
    %c101 = arith.constant 101 : index
    %33 = vector.load %arg1[%c0_28, %c0_29, %c101] : memref<1x8x1536xf32, #tpu.memory_space<vmem>>, vector<1x8x1280xf32>
    %34 = vector.shape_cast %33 : vector<1x8x1280xf32> to vector<8x1280xf32>
    %cst_30 = arith.constant dense<0.000000e+00> : vector<8x1280xf32>
    %35 = tpu.matmul %32, %34, %cst_30 {dimension_numbers = #tpu.dot_dimension_numbers<[1], [0], [0], [1], [0, 0, 1, 1], [], []>} : vector<8x8xf32>, vector<8x1280xf32>, vector<8x1280xf32> -> vector<8x1280xf32>
    %36 = arith.addf %30, %35 : vector<8x1280xf32>
    %c6 = arith.constant 6 : index
    %c0_31 = arith.constant 0 : index
    %c0_32 = arith.constant 0 : index
    %37 = vector.load %arg3[%c6, %c0_31, %c0_32] : memref<12x8x8xf32, #tpu.memory_space<vmem>>, vector<1x8x8xf32>
    %38 = vector.shape_cast %37 : vector<1x8x8xf32> to vector<8x8xf32>
    %c0_33 = arith.constant 0 : index
    %c0_34 = arith.constant 0 : index
    %c109 = arith.constant 109 : index
    %39 = vector.load %arg1[%c0_33, %c0_34, %c109] : memref<1x8x1536xf32, #tpu.memory_space<vmem>>, vector<1x8x1280xf32>
    %40 = vector.shape_cast %39 : vector<1x8x1280xf32> to vector<8x1280xf32>
    %cst_35 = arith.constant dense<0.000000e+00> : vector<8x1280xf32>
    %41 = tpu.matmul %38, %40, %cst_35 {dimension_numbers = #tpu.dot_dimension_numbers<[1], [0], [0], [1], [0, 0, 1, 1], [], []>} : vector<8x8xf32>, vector<8x1280xf32>, vector<8x1280xf32> -> vector<8x1280xf32>
    %42 = arith.addf %36, %41 : vector<8x1280xf32>
    %c7 = arith.constant 7 : index
    %c0_36 = arith.constant 0 : index
    %c0_37 = arith.constant 0 : index
    %43 = vector.load %arg3[%c7, %c0_36, %c0_37] : memref<12x8x8xf32, #tpu.memory_space<vmem>>, vector<1x8x8xf32>
    %44 = vector.shape_cast %43 : vector<1x8x8xf32> to vector<8x8xf32>
    %c0_38 = arith.constant 0 : index
    %c0_39 = arith.constant 0 : index
    %c110 = arith.constant 110 : index
    %45 = vector.load %arg1[%c0_38, %c0_39, %c110] : memref<1x8x1536xf32, #tpu.memory_space<vmem>>, vector<1x8x1280xf32>
    %46 = vector.shape_cast %45 : vector<1x8x1280xf32> to vector<8x1280xf32>
    %cst_40 = arith.constant dense<0.000000e+00> : vector<8x1280xf32>
    %47 = tpu.matmul %44, %46, %cst_40 {dimension_numbers = #tpu.dot_dimension_numbers<[1], [0], [0], [1], [0, 0, 1, 1], [], []>} : vector<8x8xf32>, vector<8x1280xf32>, vector<8x1280xf32> -> vector<8x1280xf32>
    %48 = arith.addf %42, %47 : vector<8x1280xf32>
    %c8 = arith.constant 8 : index
    %c0_41 = arith.constant 0 : index
    %c0_42 = arith.constant 0 : index
    %49 = vector.load %arg3[%c8, %c0_41, %c0_42] : memref<12x8x8xf32, #tpu.memory_space<vmem>>, vector<1x8x8xf32>
    %50 = vector.shape_cast %49 : vector<1x8x8xf32> to vector<8x8xf32>
    %c0_43 = arith.constant 0 : index
    %c0_44 = arith.constant 0 : index
    %c111 = arith.constant 111 : index
    %51 = vector.load %arg1[%c0_43, %c0_44, %c111] : memref<1x8x1536xf32, #tpu.memory_space<vmem>>, vector<1x8x1280xf32>
    %52 = vector.shape_cast %51 : vector<1x8x1280xf32> to vector<8x1280xf32>
    %cst_45 = arith.constant dense<0.000000e+00> : vector<8x1280xf32>
    %53 = tpu.matmul %50, %52, %cst_45 {dimension_numbers = #tpu.dot_dimension_numbers<[1], [0], [0], [1], [0, 0, 1, 1], [], []>} : vector<8x8xf32>, vector<8x1280xf32>, vector<8x1280xf32> -> vector<8x1280xf32>
    %54 = arith.addf %48, %53 : vector<8x1280xf32>
    %c9 = arith.constant 9 : index
    %c0_46 = arith.constant 0 : index
    %c0_47 = arith.constant 0 : index
    %55 = vector.load %arg3[%c9, %c0_46, %c0_47] : memref<12x8x8xf32, #tpu.memory_space<vmem>>, vector<1x8x8xf32>
    %56 = vector.shape_cast %55 : vector<1x8x8xf32> to vector<8x8xf32>
    %c0_48 = arith.constant 0 : index
    %c0_49 = arith.constant 0 : index
    %c0_50 = arith.constant 0 : index
    %57 = vector.load %arg1[%c0_48, %c0_49, %c0_50] : memref<1x8x1536xf32, #tpu.memory_space<vmem>>, vector<1x8x1280xf32>
    %58 = vector.shape_cast %57 : vector<1x8x1280xf32> to vector<8x1280xf32>
    %cst_51 = arith.constant dense<0.000000e+00> : vector<8x1280xf32>
    %59 = tpu.matmul %56, %58, %cst_51 {dimension_numbers = #tpu.dot_dimension_numbers<[1], [0], [0], [1], [0, 0, 1, 1], [], []>} : vector<8x8xf32>, vector<8x1280xf32>, vector<8x1280xf32> -> vector<8x1280xf32>
    %60 = arith.addf %54, %59 : vector<8x1280xf32>
    %c10 = arith.constant 10 : index
    %c0_52 = arith.constant 0 : index
    %c0_53 = arith.constant 0 : index
    %61 = vector.load %arg3[%c10, %c0_52, %c0_53] : memref<12x8x8xf32, #tpu.memory_space<vmem>>, vector<1x8x8xf32>
    %62 = vector.shape_cast %61 : vector<1x8x8xf32> to vector<8x8xf32>
    %c0_54 = arith.constant 0 : index
    %c0_55 = arith.constant 0 : index
    %c100_56 = arith.constant 100 : index
    %63 = vector.load %arg1[%c0_54, %c0_55, %c100_56] : memref<1x8x1536xf32, #tpu.memory_space<vmem>>, vector<1x8x1280xf32>
    %64 = vector.shape_cast %63 : vector<1x8x1280xf32> to vector<8x1280xf32>
    %cst_57 = arith.constant dense<0.000000e+00> : vector<8x1280xf32>
    %65 = tpu.matmul %62, %64, %cst_57 {dimension_numbers = #tpu.dot_dimension_numbers<[1], [0], [0], [1], [0, 0, 1, 1], [], []>} : vector<8x8xf32>, vector<8x1280xf32>, vector<8x1280xf32> -> vector<8x1280xf32>
    %66 = arith.addf %60, %65 : vector<8x1280xf32>
    %c11 = arith.constant 11 : index
    %c0_58 = arith.constant 0 : index
    %c0_59 = arith.constant 0 : index
    %67 = vector.load %arg3[%c11, %c0_58, %c0_59] : memref<12x8x8xf32, #tpu.memory_space<vmem>>, vector<1x8x8xf32>
    %68 = vector.shape_cast %67 : vector<1x8x8xf32> to vector<8x8xf32>
    %c0_60 = arith.constant 0 : index
    %c0_61 = arith.constant 0 : index
    %c200 = arith.constant 200 : index
    %69 = vector.load %arg1[%c0_60, %c0_61, %c200] : memref<1x8x1536xf32, #tpu.memory_space<vmem>>, vector<1x8x1280xf32>
    %70 = vector.shape_cast %69 : vector<1x8x1280xf32> to vector<8x1280xf32>
    %cst_62 = arith.constant dense<0.000000e+00> : vector<8x1280xf32>
    %71 = tpu.matmul %68, %70, %cst_62 {dimension_numbers = #tpu.dot_dimension_numbers<[1], [0], [0], [1], [0, 0, 1, 1], [], []>} : vector<8x8xf32>, vector<8x1280xf32>, vector<8x1280xf32> -> vector<8x1280xf32>
    %72 = arith.addf %66, %71 : vector<8x1280xf32>
    %c0_63 = arith.constant 0 : index
    %c0_64 = arith.constant 0 : index
    %73 = vector.load %arg4[%c0_63, %c0_64] : memref<8x1xf32, #tpu.memory_space<vmem>>, vector<8x1xf32>
    %74 = vector.broadcast %73 : vector<8x1xf32> to vector<8x1280xf32>
    %75 = arith.addf %72, %74 : vector<8x1280xf32>
    %cst_65 = arith.constant 0.000000e+00 : f32
    %76 = vector.broadcast %cst_65 : f32 to vector<8x1280xf32>
    %77 = arith.maximumf %75, %76 : vector<8x1280xf32>
    %c0_66 = arith.constant 0 : index
    %c0_67 = arith.constant 0 : index
    %78 = vector.load %arg2[%c0_66, %c0_67] : memref<1x1280xf32, #tpu.memory_space<vmem>>, vector<1x1280xf32>
    %79 = vector.broadcast %78 : vector<1x1280xf32> to vector<8x1280xf32>
    %80 = arith.mulf %77, %79 : vector<8x1280xf32>
    %c0_68 = arith.constant 0 : index
    %c0_69 = arith.constant 0 : index
    %81 = vector.load %arg8[%c0_68, %c0_69] : memref<8x1408xf32, #tpu.memory_space<vmem>>, vector<8x1280xf32>
    tpu.vector_store %arg8[%c0_68, %c0_69], %80 {strides = array<i32>} : memref<8x1408xf32, #tpu.memory_space<vmem>>, vector<8x1280xf32>,
    %c0_70 = arith.constant 0 : index
    %c0_71 = arith.constant 0 : index
    %c0_72 = arith.constant 0 : index
    %82 = vector.load %arg5[%c0_70, %c0_71, %c0_72] : memref<9x8x8xf32, #tpu.memory_space<vmem>>, vector<1x8x8xf32>
    %83 = vector.shape_cast %82 : vector<1x8x8xf32> to vector<8x8xf32>
    %c0_73 = arith.constant 0 : index
    %c0_74 = arith.constant 0 : index
    %84 = vector.load %arg8[%c0_73, %c0_74] : memref<8x1408xf32, #tpu.memory_space<vmem>>, vector<8x1280xf32>
    %cst_75 = arith.constant dense<0.000000e+00> : vector<8x1280xf32>
    %85 = tpu.matmul %83, %84, %cst_75 {dimension_numbers = #tpu.dot_dimension_numbers<[1], [0], [0], [1], [0, 0, 1, 1], [], []>} : vector<8x8xf32>, vector<8x1280xf32>, vector<8x1280xf32> -> vector<8x1280xf32>
    %c1_76 = arith.constant 1 : index
    %c0_77 = arith.constant 0 : index
    %c0_78 = arith.constant 0 : index
    %86 = vector.load %arg5[%c1_76, %c0_77, %c0_78] : memref<9x8x8xf32, #tpu.memory_space<vmem>>, vector<1x8x8xf32>
    %87 = vector.shape_cast %86 : vector<1x8x8xf32> to vector<8x8xf32>
    %c0_79 = arith.constant 0 : index
    %c1_80 = arith.constant 1 : index
    %88 = vector.load %arg8[%c0_79, %c1_80] : memref<8x1408xf32, #tpu.memory_space<vmem>>, vector<8x1280xf32>
    %cst_81 = arith.constant dense<0.000000e+00> : vector<8x1280xf32>
    %89 = tpu.matmul %87, %88, %cst_81 {dimension_numbers = #tpu.dot_dimension_numbers<[1], [0], [0], [1], [0, 0, 1, 1], [], []>} : vector<8x8xf32>, vector<8x1280xf32>, vector<8x1280xf32> -> vector<8x1280xf32>
    %90 = arith.addf %85, %89 : vector<8x1280xf32>
    %c2_82 = arith.constant 2 : index
    %c0_83 = arith.constant 0 : index
    %c0_84 = arith.constant 0 : index
    %91 = vector.load %arg5[%c2_82, %c0_83, %c0_84] : memref<9x8x8xf32, #tpu.memory_space<vmem>>, vector<1x8x8xf32>
    %92 = vector.shape_cast %91 : vector<1x8x8xf32> to vector<8x8xf32>
    %c0_85 = arith.constant 0 : index
    %c2_86 = arith.constant 2 : index
    %93 = vector.load %arg8[%c0_85, %c2_86] : memref<8x1408xf32, #tpu.memory_space<vmem>>, vector<8x1280xf32>
    %cst_87 = arith.constant dense<0.000000e+00> : vector<8x1280xf32>
    %94 = tpu.matmul %92, %93, %cst_87 {dimension_numbers = #tpu.dot_dimension_numbers<[1], [0], [0], [1], [0, 0, 1, 1], [], []>} : vector<8x8xf32>, vector<8x1280xf32>, vector<8x1280xf32> -> vector<8x1280xf32>
    %95 = arith.addf %90, %94 : vector<8x1280xf32>
    %c3_88 = arith.constant 3 : index
    %c0_89 = arith.constant 0 : index
    %c0_90 = arith.constant 0 : index
    %96 = vector.load %arg5[%c3_88, %c0_89, %c0_90] : memref<9x8x8xf32, #tpu.memory_space<vmem>>, vector<1x8x8xf32>
    %97 = vector.shape_cast %96 : vector<1x8x8xf32> to vector<8x8xf32>
    %c0_91 = arith.constant 0 : index
    %c10_92 = arith.constant 10 : index
    %98 = vector.load %arg8[%c0_91, %c10_92] : memref<8x1408xf32, #tpu.memory_space<vmem>>, vector<8x1280xf32>
    %cst_93 = arith.constant dense<0.000000e+00> : vector<8x1280xf32>
    %99 = tpu.matmul %97, %98, %cst_93 {dimension_numbers = #tpu.dot_dimension_numbers<[1], [0], [0], [1], [0, 0, 1, 1], [], []>} : vector<8x8xf32>, vector<8x1280xf32>, vector<8x1280xf32> -> vector<8x1280xf32>
    %100 = arith.addf %95, %99 : vector<8x1280xf32>
    %c4_94 = arith.constant 4 : index
    %c0_95 = arith.constant 0 : index
    %c0_96 = arith.constant 0 : index
    %101 = vector.load %arg5[%c4_94, %c0_95, %c0_96] : memref<9x8x8xf32, #tpu.memory_space<vmem>>, vector<1x8x8xf32>
    %102 = vector.shape_cast %101 : vector<1x8x8xf32> to vector<8x8xf32>
    %c0_97 = arith.constant 0 : index
    %c11_98 = arith.constant 11 : index
    %103 = vector.load %arg8[%c0_97, %c11_98] : memref<8x1408xf32, #tpu.memory_space<vmem>>, vector<8x1280xf32>
    %cst_99 = arith.constant dense<0.000000e+00> : vector<8x1280xf32>
    %104 = tpu.matmul %102, %103, %cst_99 {dimension_numbers = #tpu.dot_dimension_numbers<[1], [0], [0], [1], [0, 0, 1, 1], [], []>} : vector<8x8xf32>, vector<8x1280xf32>, vector<8x1280xf32> -> vector<8x1280xf32>
    %105 = arith.addf %100, %104 : vector<8x1280xf32>
    %c5_100 = arith.constant 5 : index
    %c0_101 = arith.constant 0 : index
    %c0_102 = arith.constant 0 : index
    %106 = vector.load %arg5[%c5_100, %c0_101, %c0_102] : memref<9x8x8xf32, #tpu.memory_space<vmem>>, vector<1x8x8xf32>
    %107 = vector.shape_cast %106 : vector<1x8x8xf32> to vector<8x8xf32>
    %c0_103 = arith.constant 0 : index
    %c12 = arith.constant 12 : index
    %108 = vector.load %arg8[%c0_103, %c12] : memref<8x1408xf32, #tpu.memory_space<vmem>>, vector<8x1280xf32>
    %cst_104 = arith.constant dense<0.000000e+00> : vector<8x1280xf32>
    %109 = tpu.matmul %107, %108, %cst_104 {dimension_numbers = #tpu.dot_dimension_numbers<[1], [0], [0], [1], [0, 0, 1, 1], [], []>} : vector<8x8xf32>, vector<8x1280xf32>, vector<8x1280xf32> -> vector<8x1280xf32>
    %110 = arith.addf %105, %109 : vector<8x1280xf32>
    %c6_105 = arith.constant 6 : index
    %c0_106 = arith.constant 0 : index
    %c0_107 = arith.constant 0 : index
    %111 = vector.load %arg5[%c6_105, %c0_106, %c0_107] : memref<9x8x8xf32, #tpu.memory_space<vmem>>, vector<1x8x8xf32>
    %112 = vector.shape_cast %111 : vector<1x8x8xf32> to vector<8x8xf32>
    %c0_108 = arith.constant 0 : index
    %c20 = arith.constant 20 : index
    %113 = vector.load %arg8[%c0_108, %c20] : memref<8x1408xf32, #tpu.memory_space<vmem>>, vector<8x1280xf32>
    %cst_109 = arith.constant dense<0.000000e+00> : vector<8x1280xf32>
    %114 = tpu.matmul %112, %113, %cst_109 {dimension_numbers = #tpu.dot_dimension_numbers<[1], [0], [0], [1], [0, 0, 1, 1], [], []>} : vector<8x8xf32>, vector<8x1280xf32>, vector<8x1280xf32> -> vector<8x1280xf32>
    %115 = arith.addf %110, %114 : vector<8x1280xf32>
    %c7_110 = arith.constant 7 : index
    %c0_111 = arith.constant 0 : index
    %c0_112 = arith.constant 0 : index
    %116 = vector.load %arg5[%c7_110, %c0_111, %c0_112] : memref<9x8x8xf32, #tpu.memory_space<vmem>>, vector<1x8x8xf32>
    %117 = vector.shape_cast %116 : vector<1x8x8xf32> to vector<8x8xf32>
    %c0_113 = arith.constant 0 : index
    %c21 = arith.constant 21 : index
    %118 = vector.load %arg8[%c0_113, %c21] : memref<8x1408xf32, #tpu.memory_space<vmem>>, vector<8x1280xf32>
    %cst_114 = arith.constant dense<0.000000e+00> : vector<8x1280xf32>
    %119 = tpu.matmul %117, %118, %cst_114 {dimension_numbers = #tpu.dot_dimension_numbers<[1], [0], [0], [1], [0, 0, 1, 1], [], []>} : vector<8x8xf32>, vector<8x1280xf32>, vector<8x1280xf32> -> vector<8x1280xf32>
    %120 = arith.addf %115, %119 : vector<8x1280xf32>
    %c8_115 = arith.constant 8 : index
    %c0_116 = arith.constant 0 : index
    %c0_117 = arith.constant 0 : index
    %121 = vector.load %arg5[%c8_115, %c0_116, %c0_117] : memref<9x8x8xf32, #tpu.memory_space<vmem>>, vector<1x8x8xf32>
    %122 = vector.shape_cast %121 : vector<1x8x8xf32> to vector<8x8xf32>
    %c0_118 = arith.constant 0 : index
    %c22 = arith.constant 22 : index
    %123 = vector.load %arg8[%c0_118, %c22] : memref<8x1408xf32, #tpu.memory_space<vmem>>, vector<8x1280xf32>
    %cst_119 = arith.constant dense<0.000000e+00> : vector<8x1280xf32>
    %124 = tpu.matmul %122, %123, %cst_119 {dimension_numbers = #tpu.dot_dimension_numbers<[1], [0], [0], [1], [0, 0, 1, 1], [], []>} : vector<8x8xf32>, vector<8x1280xf32>, vector<8x1280xf32> -> vector<8x1280xf32>
    %125 = arith.addf %120, %124 : vector<8x1280xf32>
    %c0_120 = arith.constant 0 : index
    %c0_121 = arith.constant 0 : index
    %126 = vector.load %arg6[%c0_120, %c0_121] : memref<8x1xf32, #tpu.memory_space<vmem>>, vector<8x1xf32>
    %127 = vector.broadcast %126 : vector<8x1xf32> to vector<8x1280xf32>
    %128 = arith.addf %125, %127 : vector<8x1280xf32>
    %c0_122 = arith.constant 0 : index
    %c0_123 = arith.constant 0 : index
    %c0_124 = arith.constant 0 : index
    %129 = vector.load %arg7[%c0_122, %c0_123, %c0_124] : memref<1x8x1280xf32, #tpu.memory_space<vmem>>, vector<1x8x1280xf32>
    %130 = vector.shape_cast %129 : vector<1x8x1280xf32> to vector<8x1280xf32>
    %131 = vector.shape_cast %128 : vector<8x1280xf32> to vector<1x8x1280xf32>
    tpu.vector_store %arg7[%c0_122, %c0_123, %c0_124], %131 {strides = array<i32>} : memref<1x8x1280xf32, #tpu.memory_space<vmem>>, vector<1x8x1280xf32>,
    return
  }
  func.func @transform_0(%arg0: i32) -> (i32, i32, i32) {
    %c0_i32 = arith.constant 0 : i32
    %c0_i32_0 = arith.constant 0 : i32
    %c0_i32_1 = arith.constant 0 : i32
    return %arg0, %c0_i32, %c0_i32_0 : i32, i32, i32
  }
  func.func @transform_1(%arg0: i32) -> (i32, i32) {
    %c0_i32 = arith.constant 0 : i32
    %c0_i32_0 = arith.constant 0 : i32
    %c0_i32_1 = arith.constant 0 : i32
    return %c0_i32, %c0_i32_0 : i32, i32
  }
  func.func @transform_2(%arg0: i32) -> (i32, i32, i32) {
    %c0_i32 = arith.constant 0 : i32
    %c0_i32_0 = arith.constant 0 : i32
    %c0_i32_1 = arith.constant 0 : i32
    %c0_i32_2 = arith.constant 0 : i32
    return %c0_i32, %c0_i32_0, %c0_i32_1 : i32, i32, i32
  }
  func.func @transform_3(%arg0: i32) -> (i32, i32) {
    %c0_i32 = arith.constant 0 : i32
    %c0_i32_0 = arith.constant 0 : i32
    %c0_i32_1 = arith.constant 0 : i32
    return %c0_i32, %c0_i32_0 : i32, i32
  }
  func.func @transform_4(%arg0: i32) -> (i32, i32, i32) {
    %c0_i32 = arith.constant 0 : i32
    %c0_i32_0 = arith.constant 0 : i32
    %c0_i32_1 = arith.constant 0 : i32
    %c0_i32_2 = arith.constant 0 : i32
    return %c0_i32, %c0_i32_0, %c0_i32_1 : i32, i32, i32
  }
  func.func @transform_5(%arg0: i32) -> (i32, i32) {
    %c0_i32 = arith.constant 0 : i32
    %c0_i32_0 = arith.constant 0 : i32
    %c0_i32_1 = arith.constant 0 : i32
    return %c0_i32, %c0_i32_0 : i32, i32
  }
  func.func @transform_6(%arg0: i32) -> (i32, i32, i32) {
    %c0_i32 = arith.constant 0 : i32
    %c0_i32_0 = arith.constant 0 : i32
    %c0_i32_1 = arith.constant 0 : i32
    return %arg0, %c0_i32, %c0_i32_0 : i32, i32, i32
  }
}

</mosaic_0001>

<bundles_post_ra>
// kernel: tpu_custom_call.1
= control target key start
LH: loop header
LB: loop body
LE: loop exit
PB: predicated region body
PF: predicated region fallthrough
CT: control target
= control target key end

     0   :  { %s6199_s29 = smov 38   ;;  %s7707_s0 = inlined_call_operand.vmem [shape: f32[1,8,1536], index: 0, kind: input, shape index: {}]   ;;  %s7708_s1 = inlined_call_operand.vmem [shape: f32[1,1280], index: 1, kind: input, shape index: {}]   ;;  %s7709_s2 = inlined_call_operand.vmem [shape: f32[12,8,8], index: 2, kind: input, shape index: {}]   ;;  %s7710_s3 = inlined_call_operand.vmem [shape: f32[8,1], index: 3, kind: input, shape index: {}]   ;;  %s7711_s4 = inlined_call_operand.vmem [shape: f32[9,8,8], index: 4, kind: input, shape index: {}]   ;;  %s7712_s5 = inlined_call_operand.vmem [shape: f32[8,1], index: 5, kind: input, shape index: {}]   ;;  %s7713_s6 = inlined_call_operand.hbm [shape: f32[1,8,1280], index: 6, kind: output, shape index: {}]  }
   0x1   :  { %v6258_v0 = vld [vmem:[%s7707_s0 + $0x20] sm:$0xff]  ;;  %v6263_v1 = vld [vmem:[%s7707_s0 + $0x30] sm:$0xff]  ;;  %v6277_v4 = vld [vmem:[%s7707_s0 + $0x18] sm:$0xff] }
   0x2   :  { %v6268_v2 = vld [vmem:[%s7707_s0 + $0x10] sm:$0xff]  ;;  %v6272_v3 = vpack.i.bf16 %v6263_v1, %v6258_v0  ;;  %v6287_v6 = vld [vmem:[%s7707_s0 + $0x40] sm:$0xff]  ;;  %v6292_v7 = vld [vmem:[%s7707_s0 + $0x48] sm:$0xff] }
   0x3   :  { %v6281_v5 = vpack.i.bf16 %v6277_v4, %v6268_v2 }
   0x4   :  { %5732 = vrot.lane.b32.xlu1 %v6272_v3, %s6199_s29 }
   0x5   :  { %11 = vsyncpa [#allocation4], 0  ;;  %5722 = vrot.lane.b32.xlu0 %v6281_v5, %s6199_s29  ;;  %v6298_v8 = vld [vmem:[%s7707_s0 + $0x28] sm:$0xff]  ;;  %v6303_v9 = vld [vmem:[%s7707_s0 + $0x38] sm:$0xff]  ;;  %v5741_v10 = vpack.i.bf16 %v6292_v7, %v6287_v6  ;;  %s6200_s18 = smov 39   ;;  %v5751_v15 = vpack.i.bf16 %v6258_v0, %v6268_v2  ;;  %v5761_v19 = vpack.i.bf16 %v6287_v6, %v6263_v1  ;;  %s6201_s21 = smov 37  }
   0x6   :  { %v26_v11 = vld [vmem:[%s7707_s0] sm:$0xff]  ;;  %v6313_v12 = vld [vmem:[%s7707_s0 + $0x8] sm:$0xff]  ;;  %v5736_v13 = vpack.i.bf16 %v6298_v8, %v6303_v9  ;;  %v6327_v16 = vld [vmem:[%s7707_s0 + $0x50] sm:$0xff]  ;;  %v5756_v17 = vpack.i.bf16 %v6277_v4, %v6298_v8  ;;  %v5766_v18 = vpack.i.bf16 %v6303_v9, %v6292_v7  ;;  %s6202_s22 = smov 29   ;;  %s6203_s23 = smov 28   ;;  %vm72_vm0 = vcmask 310272  }
   0x7   :  { %5742 = vrot.lane.b32.xlu2 %v5741_v10, %s6199_s29  ;;  %v6318_v14 = vpack.i.bf16 %v6313_v12, %v26_v11  ;;  %s6204_s24 = smov 27   ;;  %s6205_s25 = smov 19   ;;  %v6361_v27 = vld [vmem:[%s7709_s2 + $0x8] sm:$0xff]  ;;  %vm93_vm1 = vcmask 64512   ;;  %vm319_vm2 = vcmask 318464   ;;  %v6406_v62 = vld [vmem:[%s7709_s2] sm:$0xff]  ;;  %v5936_v63 = vpack.i.bf16 %v6287_v6, %v6298_v8 }
   0x8   :  { %s6206_s26 = smov 18   ;;  %vm567_vm3 = vcmask 302080   ;;  %vm825_vm4 = vcmask 236544   ;;  %vm1083_vm5 = vcmask 228352   ;;  %s6208_s12 = smov 56   ;;  %vm1341_vm6 = vcmask 220160  }
   0x9   :  { %vm1599_vm7 = vcmask 154624   ;;  %vm1857_vm8 = vcmask 146432   ;;  %vm2115_vm9 = vcmask 138240   ;;  %vm2835_vm10 = vcmask 457728   ;;  %s6210_s28 = smov 127   ;;  %s6213_s7 = smov 118  }
   0xa   :  { %s6214_s8 = smov 117   ;;  %s6215_s9 = smov 116   ;;  %vm3196_vm11 = vcmask 1039360   ;;  %vm3647_vm12 = vcmask 1031168   ;;  %vm3905_vm13 = vcmask 965632   ;;  %vm4163_vm14 = vcmask 957440  }
   0xb   :  { %s6216_s10 = smov 108   ;;  %s6217_s13 = smov 107   ;;  %vm4421_vm15 = vcmask 949248  }
   0xc   :  { %5737 = vrot.lane.b32.xlu1 %v5736_v13, %s6199_s29  ;;  %s6218_s16 = smov 106  }
   0xd   :  { %5727 = vrot.lane.b32.xlu0 %v6318_v14, %s6199_s29 }
   0xf   :  { %5747 = vrot.lane.b32.xlu2 %v6318_v14, %s6200_s18 }
  0x14   :  { %5752 = vrot.lane.b32.xlu1 %v5751_v15, %s6200_s18 }
  0x15   :  { %70 = vrot.lane.b32.xlu0 %v6327_v16, %s6199_s29  ;;  %s6207_s29 = smov 17  }
  0x17   :  { %5757 = vrot.lane.b32.xlu2 %v5756_v17, %s6200_s18 }
  0x1c   :  { %5767 = vrot.lane.b32.xlu1 %v5766_v18, %s6200_s18 }
  0x1d   :  { %5762 = vrot.lane.b32.xlu0 %v5761_v19, %s6200_s18 }
  0x1f   :  { %317 = vrot.lane.b32.xlu2 %v6327_v16, %s6200_s18 }
  0x24   :  { %5777 = vrot.lane.b32.xlu1 %v6318_v14, %s6201_s21 }
  0x25   :  { %5772 = vrot.lane.b32.xlu0 %v6281_v5, %s6201_s21 }
  0x27   :  { %5782 = vrot.lane.b32.xlu2 %v6272_v3, %s6201_s21 }
  0x2c   :  { %5792 = vrot.lane.b32.xlu1 %v5741_v10, %s6201_s21 }
  0x2d   :  { %5787 = vrot.lane.b32.xlu0 %v5736_v13, %s6201_s21 }
  0x2f   :  { %5797 = vrot.lane.b32.xlu2 %v6318_v14, %s6202_s22 }
  0x34   :  { %5802 = vrot.lane.b32.xlu1 %v5751_v15, %s6202_s22 }
  0x35   :  { %565 = vrot.lane.b32.xlu0 %v6327_v16, %s6201_s21 }
  0x37   :  { %5807 = vrot.lane.b32.xlu2 %v5756_v17, %s6202_s22 }
  0x3c   :  { %5817 = vrot.lane.b32.xlu1 %v5766_v18, %s6202_s22 }
  0x3d   :  { %5812 = vrot.lane.b32.xlu0 %v5761_v19, %s6202_s22 }
  0x3f   :  { %823 = vrot.lane.b32.xlu2 %v6327_v16, %s6202_s22 }
  0x44   :  { %5827 = vrot.lane.b32.xlu1 %v6318_v14, %s6203_s23 }
  0x45   :  { %5822 = vrot.lane.b32.xlu0 %v6281_v5, %s6203_s23 }
  0x47   :  { %5832 = vrot.lane.b32.xlu2 %v6272_v3, %s6203_s23 }
  0x4c   :  { %5842 = vrot.lane.b32.xlu1 %v5741_v10, %s6203_s23 }
  0x4d   :  { %5837 = vrot.lane.b32.xlu0 %v5736_v13, %s6203_s23 }
  0x4f   :  { %5847 = vrot.lane.b32.xlu2 %v6318_v14, %s6204_s24 }
  0x54   :  { %5852 = vrot.lane.b32.xlu1 %v5751_v15, %s6204_s24 }
  0x55   :  { %1081 = vrot.lane.b32.xlu0 %v6327_v16, %s6203_s23 }
  0x57   :  { %5857 = vrot.lane.b32.xlu2 %v5756_v17, %s6204_s24 }
  0x5c   :  { %5867 = vrot.lane.b32.xlu1 %v5766_v18, %s6204_s24 }
  0x5d   :  { %5862 = vrot.lane.b32.xlu0 %v5761_v19, %s6204_s24 }
  0x5f   :  { %1339 = vrot.lane.b32.xlu2 %v6327_v16, %s6204_s24 }
  0x61   :  { %v6352_v20 = vpop.permute.xlu2 %5742 }
  0x62   :  { %v5744_v30 = vunpack.i.l.bf16 %v6352_v20  ;;  %v5745_v44 = vunpack.i.h.bf16 %v6352_v20 }
  0x64   :  { %5877 = vrot.lane.b32.xlu1 %v6318_v14, %s6205_s25  ;;  %v81_v51 = vsel %vm72_vm0, %v5744_v30, %v5745_v44 }
  0x65   :  { %5872 = vrot.lane.b32.xlu0 %v6281_v5, %s6205_s25 }
  0x67   :  { %5882 = vrot.lane.b32.xlu2 %v6272_v3, %s6205_s25 }
  0x69   :  { %v6355_v21 = vpop.permute.xlu2 %5747 }
  0x6a   :  { %v5750_v37 = vunpack.i.h.bf16 %v6355_v21  ;;  %v5749_v38 = vunpack.i.l.bf16 %v6355_v21 }
  0x6c   :  { %5892 = vrot.lane.b32.xlu1 %v5741_v10, %s6205_s25  ;;  %v320_v48 = vsel %vm319_vm2, %v5749_v38, %v5750_v37 }
  0x6d   :  { %5887 = vrot.lane.b32.xlu0 %v5736_v13, %s6205_s25 }
  0x6f   :  { %5897 = vrot.lane.b32.xlu2 %v6318_v14, %s6206_s26 }
  0x71   :  { %v6370_v31 = vpop.permute.xlu2 %5757 }
  0x72   :  { %v5759_v49 = vunpack.i.l.bf16 %v6370_v31  ;;  %v5760_v53 = vunpack.i.h.bf16 %v6370_v31 }
  0x74   :  { %5902 = vrot.lane.b32.xlu1 %v5751_v15, %s6206_s26 }
  0x75   :  { %1597 = vrot.lane.b32.xlu0 %v6327_v16, %s6205_s25 }
  0x76   :  { %v5733_v22 = vpop.permute.xlu1 %5732 }
  0x77   :  { %v5734_v23 = vunpack.i.l.bf16 %v5733_v22  ;;  %v5723_v24 = vpop.permute.xlu0 %5722  ;;  %5907 = vrot.lane.b32.xlu2 %v5756_v17, %s6206_s26  ;;  %v5735_v33 = vunpack.i.h.bf16 %v5733_v22 }
  0x78   :  { %v5725_v25 = vunpack.i.h.bf16 %v5723_v24  ;;  %v5724_v26 = vunpack.i.l.bf16 %v5723_v24 }
  0x79   :  { %v318_v50 = vpop.permute.xlu2 %317 }
  0x7a   :  { %v75_v28 = vsel %vm72_vm0, %v5724_v26, %v5725_v25  ;;  %v76_v29 = vsel %vm72_vm0, %v5725_v25, %v5734_v23 }
  0x7b   :  { %152 = vmatpush.msra.mxu2 %v75_v28  ;;  %172 = vmatpush.msra.mxu3 %v76_v29 }
  0x7c   :  { %5474 = vmatmul.msk.f32.vlgmr.msra.gmra.mxu2 %vm93_vm1, %v6361_v27  ;;  %5475 = vmatmul.msk.f32.vlgmr.msra.gmra.mxu3 %vm93_vm1, %v6361_v27 }
  0x7d   :  { %5917 = vrot.lane.b32.xlu1 %v5766_v18, %s6206_s26  ;;  %5912 = vrot.lane.b32.xlu0 %v5761_v19, %s6206_s26 }
  0x7e   :  { %v5738_v32 = vpop.permute.xlu1 %5737 }
  0x7f   :  { %v5740_v34 = vunpack.i.h.bf16 %v5738_v32  ;;  %v5739_v35 = vunpack.i.l.bf16 %v5738_v32  ;;  %v5728_v36 = vpop.permute.xlu0 %5727  ;;  %1855 = vrot.lane.b32.xlu2 %v6327_v16, %s6206_s26 }
  0x80   :  { %v5730_v39 = vunpack.i.h.bf16 %v5728_v36  ;;  %v5729_v40 = vunpack.i.l.bf16 %v5728_v36 }
  0x81   :  { %v79_v41 = vsel %vm72_vm0, %v5735_v33, %v5739_v35  ;;  %v80_v42 = vsel %vm72_vm0, %v5739_v35, %v5744_v30  ;;  %v77_v43 = vsel %vm72_vm0, %v5734_v23, %v5740_v34  ;;  %v78_v47 = vsel %vm72_vm0, %v5740_v34, %v5735_v33  ;;  %v5783_v13 = vpop.permute.xlu2 %5782 }
  0x82   :  { %v73_v45 = vsel %vm72_vm0, %v5729_v40, %v5730_v39  ;;  %v74_v46 = vsel %vm72_vm0, %v5730_v39, %v5724_v26  ;;  %232 = vmatpush.msrb.mxu2 %v79_v41  ;;  %252 = vmatpush.msrb.mxu3 %v80_v42  ;;  %v5784_v23 = vunpack.i.l.bf16 %v5783_v13  ;;  %v5785_v34 = vunpack.i.h.bf16 %v5783_v13 }
  0x83   :  { %112 = vmatpush.msra.mxu0 %v73_v45  ;;  %132 = vmatpush.msra.mxu1 %v74_v46  ;;  %v6455_v46 = vld [vmem:[%s7709_s2 + $0x10] sm:$0xff] }
  0x84   :  { %5472 = vmatmul.msk.f32.vlgmr.msra.gmra.mxu0 %vm93_vm1, %v6361_v27  ;;  %5473 = vmatmul.msk.f32.vlgmr.msra.gmra.mxu1 %vm93_vm1, %v6361_v27 }
  0x85   :  { %192 = vmatpush.msrb.mxu0 %v77_v43  ;;  %212 = vmatpush.msrb.mxu1 %v78_v47 }
  0x86   :  { %5478 = vmatmul.msk.f32.vlgmr.msrb.gmra.mxu2 %vm93_vm1, %v6361_v27  ;;  %5479 = vmatmul.msk.f32.vlgmr.msrb.gmra.mxu3 %vm93_vm1, %v6361_v27  ;;  %v5753_v52 = vpop.permute.xlu1 %5752 }
  0x87   :  { %272 = vmatpush.msra.mxu0 %v81_v51  ;;  %v5755_v54 = vunpack.i.h.bf16 %v5753_v52  ;;  %v5754_v55 = vunpack.i.l.bf16 %v5753_v52  ;;  %v71_v56 = vpop.permute.xlu0 %70  ;;  %358 = vmatpush.msra.mxu2 %v320_v48 }
  0x88   :  { %v82_v57 = vsel %vm72_vm0, %v5745_v44, %v71_v56  ;;  %5927 = vrot.lane.b32.xlu1 %v6318_v14, %s6207_s29  ;;  %5922 = vrot.lane.b32.xlu0 %v6281_v5, %s6207_s29  ;;  %vm4679_vm0 = vcmask 883712  }
  0x89   :  { %292 = vmatpush.msra.mxu1 %v82_v57  ;;  %v321_v58 = vsel %vm319_vm2, %v5750_v37, %v5754_v55  ;;  %v324_v59 = vsel %vm319_vm2, %v5755_v54, %v5759_v49  ;;  %v322_v60 = vsel %vm319_vm2, %v5754_v55, %v5760_v53  ;;  %v323_v61 = vsel %vm319_vm2, %v5760_v53, %v5755_v54 }
  0x8a   :  { %378 = vmatpush.msra.mxu3 %v321_v58  ;;  %438 = vmatpush.msrb.mxu2 %v324_v59 }
  0x8b   :  { %5932 = vrot.lane.b32.xlu2 %v6272_v3, %s6207_s29 }
  0x8c   :  { %5476 = vmatmul.msk.f32.vlgmr.msrb.gmra.mxu0 %vm93_vm1, %v6361_v27  ;;  %5477 = vmatmul.msk.f32.vlgmr.msrb.gmra.mxu1 %vm93_vm1, %v6361_v27 }
  0x8d   :  { %398 = vmatpush.msrb.mxu0 %v322_v60  ;;  %418 = vmatpush.msrb.mxu1 %v323_v61 }
  0x8e   :  { %5482 = vmatmul.msk.f32.vlgmr.msra.gmra.mxu2 %vm93_vm1, %v6406_v62  ;;  %5483 = vmatmul.msk.f32.vlgmr.msra.gmra.mxu3 %vm93_vm1, %v6406_v62  ;;  %v5768_v5 = vpop.permute.xlu1 %5767 }
  0x8f   :  { %v5770_v10 = vunpack.i.h.bf16 %v5768_v5  ;;  %v5769_v3 = vunpack.i.l.bf16 %v5768_v5  ;;  %v5763_v11 = vpop.permute.xlu0 %5762 }
  0x90   :  { %v5765_v14 = vunpack.i.h.bf16 %v5763_v11  ;;  %v5764_v15 = vunpack.i.l.bf16 %v5763_v11  ;;  %5937 = vrot.lane.b32.xlu1 %v5936_v63, %s6207_s29  ;;  %2107 = vrot.lane.b32.xlu0 %v6303_v9, %s6207_s29 }
  0x91   :  { %v329_v21 = vsel %vm319_vm2, %v5769_v3, %v318_v50 }
  0x92   :  { %v325_v17 = vsel %vm319_vm2, %v5759_v49, %v5764_v15  ;;  %v328_v18 = vsel %vm319_vm2, %v5765_v14, %v5769_v3  ;;  %v326_v19 = vsel %vm319_vm2, %v5764_v15, %v5770_v10  ;;  %v327_v20 = vsel %vm319_vm2, %v5770_v10, %v5765_v14  ;;  %v6487_v15 = vld [vmem:[%s7709_s2 + $0x18] sm:$0xff] }
  0x93   :  { %458 = vmatpush.msrb.mxu3 %v325_v17  ;;  %518 = vmatpush.msra.mxu2 %v328_v18  ;;  %v5941_v49 = vpack.i.bf16 %v6327_v16, %v6292_v7  ;;  %vm4937_vm2 = vcmask 875520  }
  0x94   :  { %5480 = vmatmul.msk.f32.vlgmr.msra.gmra.mxu0 %vm93_vm1, %v6361_v27  ;;  %5481 = vmatmul.msk.f32.vlgmr.msra.gmra.mxu1 %vm93_vm1, %v6361_v27  ;;  %v5798_v27 = vpop.permute.xlu2 %5797 }
  0x95   :  { %478 = vmatpush.msra.mxu0 %v326_v19  ;;  %498 = vmatpush.msra.mxu1 %v327_v20  ;;  %v5800_v40 = vunpack.i.h.bf16 %v5798_v27  ;;  %v5799_v41 = vunpack.i.l.bf16 %v5798_v27 }
  0x96   :  { %5486 = vmatmul.msk.f32.vlgmr.msrb.gmra.mxu2 %vm93_vm1, %v6406_v62  ;;  %5487 = vmatmul.msk.f32.vlgmr.msrb.gmra.mxu3 %vm93_vm1, %v6406_v62  ;;  %v5778_v22 = vpop.permute.xlu1 %5777 }
  0x97   :  { %v5773_v24 = vpop.permute.xlu0 %5772  ;;  %538 = vmatpush.msra.mxu3 %v329_v21  ;;  %v5780_v25 = vunpack.i.h.bf16 %v5778_v22  ;;  %v5779_v26 = vunpack.i.l.bf16 %v5778_v22  ;;  %v826_v48 = vsel %vm825_vm4, %v5799_v41, %v5800_v40  ;;  %5942 = vrot.lane.b32.xlu2 %v5941_v49, %s6207_s29 }
  0x98   :  { %v5775_v28 = vunpack.i.h.bf16 %v5773_v24  ;;  %v5774_v29 = vunpack.i.l.bf16 %v5773_v24 }
  0x99   :  { %v568_v31 = vsel %vm567_vm3, %v5779_v26, %v5780_v25  ;;  %v5946_v26 = vpack.i.bf16 %v6268_v2, %v6313_v12  ;;  %v5951_v2 = vpack.i.bf16 %v6298_v8, %v6277_v4 }
  0x9a   :  { %v570_v30 = vsel %vm567_vm3, %v5774_v29, %v5775_v28  ;;  %v569_v32 = vsel %vm567_vm3, %v5780_v25, %v5774_v29  ;;  %v571_v33 = vsel %vm567_vm3, %v5775_v28, %v5784_v23 }
  0x9b   :  { %646 = vmatpush.msrb.mxu2 %v570_v30  ;;  %666 = vmatpush.msrb.mxu3 %v571_v33 }
  0x9c   :  { %5484 = vmatmul.msk.f32.vlgmr.msrb.gmra.mxu0 %vm93_vm1, %v6406_v62  ;;  %5485 = vmatmul.msk.f32.vlgmr.msrb.gmra.mxu1 %vm93_vm1, %v6406_v62  ;;  %v5808_v47 = vpop.permute.xlu2 %5807 }
  0x9d   :  { %606 = vmatpush.msrb.mxu0 %v568_v31  ;;  %626 = vmatpush.msrb.mxu1 %v569_v32  ;;  %v5809_v55 = vunpack.i.l.bf16 %v5808_v47  ;;  %v5810_v61 = vunpack.i.h.bf16 %v5808_v47  ;;  %v6561_v47 = vld [vmem:[%s7709_s2 + $0x20] sm:$0xff] }
  0x9e   :  { %5490 = vmatmul.msk.f32.vlgmr.msra.gmra.mxu2 %vm93_vm1, %v6406_v62  ;;  %5491 = vmatmul.msk.f32.vlgmr.msra.gmra.mxu3 %vm93_vm1, %v6406_v62  ;;  %v5793_v35 = vpop.permute.xlu1 %5792 }
  0x9f   :  { %v5788_v36 = vpop.permute.xlu0 %5787  ;;  %v5794_v37 = vunpack.i.l.bf16 %v5793_v35  ;;  %v5795_v50 = vunpack.i.h.bf16 %v5793_v35  ;;  %5947 = vrot.lane.b32.xlu0 %v5946_v26, %s6208_s12  ;;  %5952 = vrot.lane.b32.xlu1 %v5951_v2, %s6208_s12 }
  0xa0   :  { %v5790_v38 = vunpack.i.h.bf16 %v5788_v36  ;;  %v5789_v39 = vunpack.i.l.bf16 %v5788_v36 }
  0xa1   :  { %v576_v58 = vsel %vm567_vm3, %v5794_v37, %v5795_v50 }
  0xa2   :  { %v574_v42 = vsel %vm567_vm3, %v5785_v34, %v5789_v39  ;;  %v572_v43 = vsel %vm567_vm3, %v5784_v23, %v5790_v38  ;;  %v573_v44 = vsel %vm567_vm3, %v5790_v38, %v5785_v34  ;;  %v575_v45 = vsel %vm567_vm3, %v5789_v39, %v5794_v37 }
  0xa3   :  { %726 = vmatpush.msra.mxu2 %v574_v42  ;;  %746 = vmatpush.msra.mxu3 %v575_v45 }
  0xa4   :  { %5488 = vmatmul.msk.f32.vlgmr.msra.gmra.mxu0 %vm93_vm1, %v6406_v62  ;;  %5489 = vmatmul.msk.f32.vlgmr.msra.gmra.mxu1 %vm93_vm1, %v6406_v62  ;;  %v824_v59 = vpop.permute.xlu2 %823 }
  0xa5   :  { %686 = vmatpush.msra.mxu0 %v572_v43  ;;  %706 = vmatpush.msra.mxu1 %v573_v44 }
  0xa6   :  { %5495 = vmatmul.msk.f32.vlgmr.msrb.gmra.mxu2 %vm93_vm1, %v6455_v46  ;;  %5496 = vmatmul.msk.f32.vlgmr.msrb.gmra.mxu3 %vm93_vm1, %v6455_v46  ;;  %v5803_v51 = vpop.permute.xlu1 %5802 }
  0xa7   :  { %v566_v52 = vpop.permute.xlu0 %565  ;;  %v5804_v53 = vunpack.i.l.bf16 %v5803_v51  ;;  %864 = vmatpush.msrb.mxu2 %v826_v48  ;;  %v5805_v54 = vunpack.i.h.bf16 %v5803_v51  ;;  %2831 = vrot.lane.b32.xlu1 %v6327_v16, %s6208_s12 }
  0xa8   :  { %v577_v57 = vsel %vm567_vm3, %v5795_v50, %v566_v52  ;;  %vm5195_vm3 = vcmask 867328  }
  0xa9   :  { %v827_v56 = vsel %vm825_vm4, %v5800_v40, %v5804_v53  ;;  %v830_v60 = vsel %vm825_vm4, %v5805_v54, %v5809_v55  ;;  %v828_v11 = vsel %vm825_vm4, %v5804_v53, %v5810_v61  ;;  %v829_v13 = vsel %vm825_vm4, %v5810_v61, %v5805_v54 }
  0xaa   :  { %884 = vmatpush.msrb.mxu3 %v827_v56  ;;  %v5961_v40 = vpack.i.bf16 %v6292_v7, %v6303_v9  ;;  %v5956_v61 = vpack.i.bf16 %v6258_v0, %v6263_v1  ;;  %v6601_v0 = vld [vmem:[%s7709_s2 + $0x28] sm:$0xff] }
  0xac   :  { %5493 = vmatmul.msk.f32.vlgmr.msrb.gmra.mxu0 %vm93_vm1, %v6455_v46  ;;  %5494 = vmatmul.msk.f32.vlgmr.msrb.gmra.mxu1 %vm93_vm1, %v6455_v46  ;;  %v5833_v19 = vpop.permute.xlu2 %5832 }
  0xad   :  { %766 = vmatpush.msrb.mxu0 %v576_v58  ;;  %786 = vmatpush.msrb.mxu1 %v577_v57  ;;  %v5834_v25 = vunpack.i.l.bf16 %v5833_v19  ;;  %v5835_v34 = vunpack.i.h.bf16 %v5833_v19 }
  0xae   :  { %5499 = vmatmul.msk.f32.vlgmr.msra.gmra.mxu2 %vm93_vm1, %v6455_v46  ;;  %5500 = vmatmul.msk.f32.vlgmr.msra.gmra.mxu3 %vm93_vm1, %v6455_v46  ;;  %v5818_v62 = vpop.permute.xlu1 %5817 }
  0xaf   :  { %944 = vmatpush.msra.mxu2 %v830_v60  ;;  %v5813_v63 = vpop.permute.xlu0 %5812  ;;  %v5819_v5 = vunpack.i.l.bf16 %v5818_v62  ;;  %v5820_v20 = vunpack.i.h.bf16 %v5818_v62  ;;  %5962 = vrot.lane.b32.xlu0 %v5961_v40, %s6208_s12 }
  0xb0   :  { %v5815_v10 = vunpack.i.h.bf16 %v5813_v63  ;;  %v5814_v3 = vunpack.i.l.bf16 %v5813_v63  ;;  %5957 = vrot.lane.b32.xlu2 %v5956_v61, %s6208_s12 }
  0xb1   :  { %v835_v18 = vsel %vm825_vm4, %v5819_v5, %v824_v59 }
  0xb2   :  { %v831_v14 = vsel %vm825_vm4, %v5809_v55, %v5814_v3  ;;  %v834_v17 = vsel %vm825_vm4, %v5815_v10, %v5819_v5  ;;  %v832_v28 = vsel %vm825_vm4, %v5814_v3, %v5820_v20  ;;  %v833_v29 = vsel %vm825_vm4, %v5820_v20, %v5815_v10 }
  0xb3   :  { %964 = vmatpush.msra.mxu3 %v831_v14 }
  0xb4   :  { %5497 = vmatmul.msk.f32.vlgmr.msra.gmra.mxu0 %vm93_vm1, %v6455_v46  ;;  %5498 = vmatmul.msk.f32.vlgmr.msra.gmra.mxu1 %vm93_vm1, %v6455_v46  ;;  %v5848_v4 = vpop.permute.xlu2 %5847 }
  0xb5   :  { %904 = vmatpush.msra.mxu0 %v828_v11  ;;  %924 = vmatpush.msra.mxu1 %v829_v13  ;;  %v5850_v44 = vunpack.i.h.bf16 %v5848_v4  ;;  %v5849_v45 = vunpack.i.l.bf16 %v5848_v4 }
  0xb6   :  { %5504 = vmatmul.msk.f32.vlgmr.msrb.gmra.mxu2 %vm93_vm1, %v6487_v15  ;;  %5505 = vmatmul.msk.f32.vlgmr.msrb.gmra.mxu3 %vm93_vm1, %v6487_v15  ;;  %v5828_v21 = vpop.permute.xlu1 %5827 }
  0xb7   :  { %1024 = vmatpush.msrb.mxu2 %v834_v17  ;;  %v5823_v22 = vpop.permute.xlu0 %5822  ;;  %1044 = vmatpush.msrb.mxu3 %v835_v18  ;;  %v5830_v12 = vunpack.i.h.bf16 %v5828_v21  ;;  %v5829_v31 = vunpack.i.l.bf16 %v5828_v21  ;;  %v1342_v16 = vsel %vm1341_vm6, %v5849_v45, %v5850_v44 }
  0xb8   :  { %v5825_v23 = vunpack.i.h.bf16 %v5823_v22  ;;  %v5824_v24 = vunpack.i.l.bf16 %v5823_v22 }
  0xb9   :  { %v6524_v8 = vsel %vm1083_vm5, %v5829_v31, %v5830_v12 }
  0xba   :  { %v6509_v27 = vsel %vm1083_vm5, %v5824_v24, %v5825_v23  ;;  %v6512_v30 = vsel %vm1083_vm5, %v5825_v23, %v5834_v25  ;;  %v6527_v37 = vsel %vm1083_vm5, %v5830_v12, %v5824_v24 }
  0xbc   :  { %5501 = vmatmul.msk.f32.vlgmr.msrb.gmra.mxu0 %vm93_vm1, %v6455_v46  ;;  %5502 = vmatmul.msk.f32.vlgmr.msrb.gmra.mxu1 %vm93_vm1, %v6455_v46  ;;  %v5858_v48 = vpop.permute.xlu2 %5857 }
  0xbd   :  { %984 = vmatpush.msrb.mxu0 %v832_v28  ;;  %1004 = vmatpush.msrb.mxu1 %v833_v29  ;;  %v5859_v53 = vunpack.i.l.bf16 %v5858_v48  ;;  %v5860_v62 = vunpack.i.h.bf16 %v5858_v48  ;;  %v6647_v48 = vld [vmem:[%s7709_s2 + $0x30] sm:$0xff] }
  0xbe   :  { %5508 = vmatmul.msk.f32.vlgmr.msra.gmra.mxu2 %vm93_vm1, %v6487_v15  ;;  %5509 = vmatmul.msk.f32.vlgmr.msra.gmra.mxu3 %vm93_vm1, %v6487_v15  ;;  %v5843_v32 = vpop.permute.xlu1 %5842 }
  0xbf   :  { %v5838_v33 = vpop.permute.xlu0 %5837  ;;  %1162 = vmatpush.msra.mxu2 %v6509_v27  ;;  %1182 = vmatpush.msra.mxu3 %v6512_v30  ;;  %v5844_v36 = vunpack.i.l.bf16 %v5843_v32  ;;  %v5845_v50 = vunpack.i.h.bf16 %v5843_v32 }
  0xc0   :  { %v5839_v35 = vunpack.i.l.bf16 %v5838_v33  ;;  %v5840_v41 = vunpack.i.h.bf16 %v5838_v33 }
  0xc1   :  { %v6579_v57 = vsel %vm1083_vm5, %v5844_v36, %v5845_v50 }
  0xc2   :  { %v6534_v38 = vsel %vm1083_vm5, %v5835_v34, %v5839_v35  ;;  %v6537_v39 = vsel %vm1083_vm5, %v5839_v35, %v5844_v36  ;;  %v6553_v7 = vsel %vm1083_vm5, %v5834_v25, %v5840_v41  ;;  %v6556_v9 = vsel %vm1083_vm5, %v5840_v41, %v5835_v34 }
  0xc4   :  { %5506 = vmatmul.msk.f32.vlgmr.msra.gmra.mxu0 %vm93_vm1, %v6487_v15  ;;  %5507 = vmatmul.msk.f32.vlgmr.msra.gmra.mxu1 %vm93_vm1, %v6487_v15  ;;  %v1340_v58 = vpop.permute.xlu2 %1339 }
  0xc5   :  { %1122 = vmatpush.msra.mxu0 %v6524_v8  ;;  %1142 = vmatpush.msra.mxu1 %v6527_v37 }
  0xc6   :  { %5512 = vmatmul.msk.f32.vlgmr.msrb.gmra.mxu2 %vm93_vm1, %v6487_v15  ;;  %5513 = vmatmul.msk.f32.vlgmr.msrb.gmra.mxu3 %vm93_vm1, %v6487_v15  ;;  %v5853_v42 = vpop.permute.xlu1 %5852 }
  0xc7   :  { %1242 = vmatpush.msrb.mxu2 %v6534_v38  ;;  %v1082_v43 = vpop.permute.xlu0 %1081  ;;  %1262 = vmatpush.msrb.mxu3 %v6537_v39  ;;  %v5854_v46 = vunpack.i.l.bf16 %v5853_v42  ;;  %v5855_v52 = vunpack.i.h.bf16 %v5853_v42 }
  0xc8   :  { %v6576_v56 = vsel %vm1083_vm5, %v5845_v50, %v1082_v43 }
  0xc9   :  { %v1343_v49 = vsel %vm1341_vm6, %v5850_v44, %v5854_v46  ;;  %v1346_v59 = vsel %vm1341_vm6, %v5855_v52, %v5859_v53  ;;  %v1344_v3 = vsel %vm1341_vm6, %v5854_v46, %v5860_v62  ;;  %v1345_v11 = vsel %vm1341_vm6, %v5860_v62, %v5855_v52 }
  0xcc   :  { %5510 = vmatmul.msk.f32.vlgmr.msrb.gmra.mxu0 %vm93_vm1, %v6487_v15  ;;  %5511 = vmatmul.msk.f32.vlgmr.msrb.gmra.mxu1 %vm93_vm1, %v6487_v15  ;;  %v2801_v15 = vld [vmem:[%s7707_s0 + $0x58] sm:$0xff]  ;;  %v5883_v17 = vpop.permute.xlu2 %5882 }
  0xcd   :  { %1202 = vmatpush.msrb.mxu0 %v6553_v7  ;;  %1222 = vmatpush.msrb.mxu1 %v6556_v9  ;;  %v5966_v18 = vpack.i.bf16 %v2801_v15, %v6287_v6  ;;  %v5884_v22 = vunpack.i.l.bf16 %v5883_v17  ;;  %v5885_v12 = vunpack.i.h.bf16 %v5883_v17  ;;  %v6680_v17 = vld [vmem:[%s7709_s2 + $0x38] sm:$0xff] }
  0xce   :  { %5517 = vmatmul.msk.f32.vlgmr.msra.gmra.mxu2 %vm93_vm1, %v6561_v47  ;;  %5518 = vmatmul.msk.f32.vlgmr.msra.gmra.mxu3 %vm93_vm1, %v6561_v47  ;;  %v5868_v55 = vpop.permute.xlu1 %5867 }
  0xcf   :  { %1380 = vmatpush.msra.mxu2 %v1342_v16  ;;  %1400 = vmatpush.msra.mxu3 %v1343_v49  ;;  %v5863_v51 = vpop.permute.xlu0 %5862  ;;  %v5869_v63 = vunpack.i.l.bf16 %v5868_v55  ;;  %v5870_v19 = vunpack.i.h.bf16 %v5868_v55 }
  0xd0   :  { %v5864_v54 = vunpack.i.l.bf16 %v5863_v51  ;;  %v5865_v5 = vunpack.i.h.bf16 %v5863_v51  ;;  %5967 = vrot.lane.b32.xlu2 %v5966_v18, %s6208_s12 }
  0xd1   :  { %v1351_v14 = vsel %vm1341_vm6, %v5869_v63, %v1340_v58 }
  0xd2   :  { %v1347_v60 = vsel %vm1341_vm6, %v5859_v53, %v5864_v54  ;;  %v1350_v13 = vsel %vm1341_vm6, %v5865_v5, %v5869_v63  ;;  %v1348_v23 = vsel %vm1341_vm6, %v5864_v54, %v5870_v19  ;;  %v1349_v24 = vsel %vm1341_vm6, %v5870_v19, %v5865_v5 }
  0xd4   :  { %5515 = vmatmul.msk.f32.vlgmr.msra.gmra.mxu0 %vm93_vm1, %v6561_v47  ;;  %5516 = vmatmul.msk.f32.vlgmr.msra.gmra.mxu1 %vm93_vm1, %v6561_v47  ;;  %v5898_v33 = vpop.permute.xlu2 %5897 }
  0xd5   :  { %1282 = vmatpush.msra.mxu0 %v6579_v57  ;;  %1302 = vmatpush.msra.mxu1 %v6576_v56  ;;  %v5900_v43 = vunpack.i.h.bf16 %v5898_v33  ;;  %v5899_v44 = vunpack.i.l.bf16 %v5898_v33 }
  0xd6   :  { %5521 = vmatmul.msk.f32.vlgmr.msrb.gmra.mxu2 %vm93_vm1, %v6561_v47  ;;  %5522 = vmatmul.msk.f32.vlgmr.msrb.gmra.mxu3 %vm93_vm1, %v6561_v47  ;;  %v5878_v10 = vpop.permute.xlu1 %5877 }
  0xd7   :  { %1460 = vmatpush.msrb.mxu2 %v1346_v59  ;;  %1480 = vmatpush.msrb.mxu3 %v1347_v60  ;;  %v5873_v1 = vpop.permute.xlu0 %5872  ;;  %v5880_v29 = vunpack.i.h.bf16 %v5878_v10  ;;  %v5879_v2 = vunpack.i.l.bf16 %v5878_v10  ;;  %v1858_v49 = vsel %vm1857_vm8, %v5899_v44, %v5900_v43 }
  0xd8   :  { %v5875_v20 = vunpack.i.h.bf16 %v5873_v1  ;;  %v5874_v21 = vunpack.i.l.bf16 %v5873_v1 }
  0xd9   :  { %v1600_v34 = vsel %vm1599_vm7, %v5879_v2, %v5880_v29 }
  0xda   :  { %v1602_v25 = vsel %vm1599_vm7, %v5874_v21, %v5875_v20  ;;  %v1603_v26 = vsel %vm1599_vm7, %v5875_v20, %v5884_v22  ;;  %v1601_v35 = vsel %vm1599_vm7, %v5880_v29, %v5874_v21 }
  0xdc   :  { %5519 = vmatmul.msk.f32.vlgmr.msrb.gmra.mxu0 %vm93_vm1, %v6561_v47  ;;  %5520 = vmatmul.msk.f32.vlgmr.msrb.gmra.mxu1 %vm93_vm1, %v6561_v47  ;;  %v5908_v16 = vpop.permute.xlu2 %5907 }
  0xdd   :  { %1420 = vmatpush.msrb.mxu0 %v1344_v3  ;;  %1440 = vmatpush.msrb.mxu1 %v1345_v11  ;;  %v5909_v54 = vunpack.i.l.bf16 %v5908_v16  ;;  %v5910_v5 = vunpack.i.h.bf16 %v5908_v16 }
  0xde   :  { %5526 = vmatmul.msk.f32.vlgmr.msra.gmra.mxu2 %vm93_vm1, %v6601_v0  ;;  %5527 = vmatmul.msk.f32.vlgmr.msra.gmra.mxu3 %vm93_vm1, %v6601_v0  ;;  %v5893_v6 = vpop.permute.xlu1 %5892 }
  0xdf   :  { %1540 = vmatpush.msra.mxu2 %v1350_v13  ;;  %1560 = vmatpush.msra.mxu3 %v1351_v14  ;;  %v5888_v28 = vpop.permute.xlu0 %5887  ;;  %v5894_v32 = vunpack.i.l.bf16 %v5893_v6  ;;  %v5895_v52 = vunpack.i.h.bf16 %v5893_v6 }
  0xe0   :  { %v5889_v31 = vunpack.i.l.bf16 %v5888_v28  ;;  %v5890_v42 = vunpack.i.h.bf16 %v5888_v28 }
  0xe1   :  { %v1608_v59 = vsel %vm1599_vm7, %v5894_v32, %v5895_v52 }
  0xe2   :  { %v1606_v36 = vsel %vm1599_vm7, %v5885_v12, %v5889_v31  ;;  %v1607_v4 = vsel %vm1599_vm7, %v5889_v31, %v5894_v32  ;;  %v1604_v46 = vsel %vm1599_vm7, %v5884_v22, %v5890_v42 }
  0xe4   :  { %5523 = vmatmul.msk.f32.vlgmr.msra.gmra.mxu0 %vm93_vm1, %v6561_v47  ;;  %5524 = vmatmul.msk.f32.vlgmr.msra.gmra.mxu1 %vm93_vm1, %v6561_v47  ;;  %v1605_v47 = vsel %vm1599_vm7, %v5890_v42, %v5885_v12  ;;  %v1856_v61 = vpop.permute.xlu2 %1855 }
  0xe5   :  { %1500 = vmatpush.msra.mxu0 %v1348_v23  ;;  %1520 = vmatpush.msra.mxu1 %v1349_v24 }
  0xe6   :  { %5530 = vmatmul.msk.f32.vlgmr.msrb.gmra.mxu2 %vm93_vm1, %v6601_v0  ;;  %5531 = vmatmul.msk.f32.vlgmr.msrb.gmra.mxu3 %vm93_vm1, %v6601_v0  ;;  %v5903_v41 = vpop.permute.xlu1 %5902 }
  0xe7   :  { %1678 = vmatpush.msrb.mxu2 %v1602_v25  ;;  %1698 = vmatpush.msrb.mxu3 %v1603_v26  ;;  %v1598_v40 = vpop.permute.xlu0 %1597  ;;  %v5904_v45 = vunpack.i.l.bf16 %v5903_v41  ;;  %v5905_v53 = vunpack.i.h.bf16 %v5903_v41 }
  0xe8   :  { %v1609_v58 = vsel %vm1599_vm7, %v5895_v52, %v1598_v40 }
  0xe9   :  { %v1859_v50 = vsel %vm1857_vm8, %v5900_v43, %v5904_v45  ;;  %v1862_v62 = vsel %vm1857_vm8, %v5905_v53, %v5909_v54  ;;  %v1860_v14 = vsel %vm1857_vm8, %v5904_v45, %v5910_v5  ;;  %v1861_v15 = vsel %vm1857_vm8, %v5910_v5, %v5905_v53  ;;  %v2351_v5 = vld [vmem:[%s7707_s0] sm:$0xff] }
  0xec   :  { %5528 = vmatmul.msk.f32.vlgmr.msrb.gmra.mxu0 %vm93_vm1, %v6601_v0  ;;  %5529 = vmatmul.msk.f32.vlgmr.msrb.gmra.mxu1 %vm93_vm1, %v6601_v0  ;;  %v5933_v21 = vpop.permute.xlu2 %5932 }
  0xed   :  { %1638 = vmatpush.msrb.mxu0 %v1600_v34  ;;  %1658 = vmatpush.msrb.mxu1 %v1601_v35  ;;  %v5934_v25 = vunpack.i.l.bf16 %v5933_v21  ;;  %v5935_v40 = vunpack.i.h.bf16 %v5933_v21 }
  0xee   :  { %5534 = vmatmul.msk.f32.vlgmr.msra.gmra.mxu2 %vm93_vm1, %v6601_v0  ;;  %5535 = vmatmul.msk.f32.vlgmr.msra.gmra.mxu3 %vm93_vm1, %v6601_v0 }
  0xef   :  { %1758 = vmatpush.msra.mxu2 %v1606_v36  ;;  %1778 = vmatpush.msra.mxu3 %v1607_v4  ;;  %v5913_v51 = vpop.permute.xlu0 %5912  ;;  %v5918_v60 = vpop.permute.xlu1 %5917 }
  0xf0   :  { %v5914_v55 = vunpack.i.l.bf16 %v5913_v51  ;;  %v5919_v11 = vunpack.i.l.bf16 %v5918_v60  ;;  %v5920_v22 = vunpack.i.h.bf16 %v5918_v60 }
  0xf2   :  { %v1863_v63 = vsel %vm1857_vm8, %v5909_v54, %v5914_v55  ;;  %v1867_v19 = vsel %vm1857_vm8, %v5919_v11, %v1856_v61  ;;  %v1864_v12 = vsel %vm1857_vm8, %v5914_v55, %v5920_v22 }
  0xf4   :  { %5532 = vmatmul.msk.f32.vlgmr.msra.gmra.mxu0 %vm93_vm1, %v6601_v0  ;;  %5533 = vmatmul.msk.f32.vlgmr.msra.gmra.mxu1 %vm93_vm1, %v6601_v0  ;;  %v5915_v0 = vunpack.i.h.bf16 %v5913_v51 }
  0xf5   :  { %1718 = vmatpush.msra.mxu0 %v1604_v46  ;;  %1738 = vmatpush.msra.mxu1 %v1605_v47 }
  0xf6   :  { %5539 = vmatmul.msk.f32.vlgmr.msrb.gmra.mxu2 %vm93_vm1, %v6647_v48  ;;  %5540 = vmatmul.msk.f32.vlgmr.msrb.gmra.mxu3 %vm93_vm1, %v6647_v48  ;;  %v1866_v18 = vsel %vm1857_vm8, %v5915_v0, %v5919_v11  ;;  %v1865_v31 = vsel %vm1857_vm8, %v5920_v22, %v5915_v0  ;;  %v2352_v11 = vld [vmem:[%s7707_s0 + $0x8] sm:$0xff]  ;;  %v2355_v22 = vld [vmem:[%s7707_s0 + $0x20] sm:$0xff] }
  0xf7   :  { %1896 = vmatpush.msrb.mxu2 %v1858_v49  ;;  %1916 = vmatpush.msrb.mxu3 %v1859_v50 }
  0xfa   :  { %v5928_v20 = vpop.permute.xlu1 %5927  ;;  %v5923_v23 = vpop.permute.xlu0 %5922 }
  0xfb   :  { %v5925_v24 = vunpack.i.h.bf16 %v5923_v23  ;;  %v5924_v6 = vunpack.i.l.bf16 %v5923_v23  ;;  %v5930_v34 = vunpack.i.h.bf16 %v5928_v20  ;;  %v5929_v35 = vunpack.i.l.bf16 %v5928_v20  ;;  %v2356_v23 = vld [vmem:[%s7707_s0 + $0x28] sm:$0xff] }
  0xfc   :  { %5537 = vmatmul.msk.f32.vlgmr.msrb.gmra.mxu0 %vm93_vm1, %v6647_v48  ;;  %5538 = vmatmul.msk.f32.vlgmr.msrb.gmra.mxu1 %vm93_vm1, %v6647_v48 }
  0xfd   :  { %1798 = vmatpush.msrb.mxu0 %v1608_v59  ;;  %1818 = vmatpush.msrb.mxu1 %v1609_v58  ;;  %v2118_v32 = vsel %vm2115_vm9, %v5924_v6, %v5925_v24  ;;  %v2119_v33 = vsel %vm2115_vm9, %v5925_v24, %v5934_v25  ;;  %v2117_v16 = vsel %vm2115_vm9, %v5930_v34, %v5924_v6 }
  0xfe   :  { %5543 = vmatmul.msk.f32.vlgmr.msra.gmra.mxu2 %vm93_vm1, %v6647_v48  ;;  %5544 = vmatmul.msk.f32.vlgmr.msra.gmra.mxu3 %vm93_vm1, %v6647_v48 }
  0xff   :  { %v6671_v10 = vpop.f32.mrf.mxu2  ;;  %v6673_v3 = vpop.f32.mrf.mxu3  ;;  %1976 = vmatpush.msra.mxu2 %v1862_v62  ;;  %1996 = vmatpush.msra.mxu3 %v1863_v63  ;;  %v5558_v62 = vld [vmem:[%s7709_s2 + $0x40] sm:$0xff] }
 0x100   :  { %v5943_v63 = vpop.permute.xlu2 %5942 }
 0x101   :  { %v114_v1 = vpop.f32.mrf.mxu0  ;;  %v134_v13 = vpop.f32.mrf.mxu1  ;;  %v5945_v0 = vunpack.i.h.bf16 %v5943_v63 }
 0x102   :  { %v5938_v36 = vpop.permute.xlu1 %5937  ;;  %v2108_v41 = vpop.permute.xlu0 %2107 }
 0x103   :  { %v5940_v4 = vunpack.i.h.bf16 %v5938_v36  ;;  %v2122_v49 = vsel %vm2115_vm9, %v5935_v40, %v2108_v41  ;;  %v5939_v51 = vunpack.i.l.bf16 %v5938_v36 }
 0x104   :  { %5541 = vmatmul.msk.f32.vlgmr.msra.gmra.mxu0 %vm93_vm1, %v6647_v48  ;;  %5542 = vmatmul.msk.f32.vlgmr.msra.gmra.mxu1 %vm93_vm1, %v6647_v48 }
 0x105   :  { %1936 = vmatpush.msra.mxu0 %v1860_v14  ;;  %1956 = vmatpush.msra.mxu1 %v1861_v15  ;;  %v2123_v50 = vsel %vm2115_vm9, %v2108_v41, %v5940_v4  ;;  %v2120_v60 = vsel %vm2115_vm9, %v5934_v25, %v5939_v51  ;;  %v2121_v61 = vsel %vm2115_vm9, %v5939_v51, %v5935_v40 }
 0x106   :  { %5548 = vmatmul.msk.f32.vlgmr.msrb.gmra.mxu2 %vm93_vm1, %v6680_v17  ;;  %5549 = vmatmul.msk.f32.vlgmr.msrb.gmra.mxu3 %vm93_vm1, %v6680_v17 }
 0x107   :  { %2056 = vmatpush.msrb.mxu2 %v1866_v18  ;;  %2076 = vmatpush.msrb.mxu3 %v1867_v19 }
 0x109   :  { %v6692_v26 = vpop.f32.mrf.mxu2  ;;  %v6694_v28 = vpop.f32.mrf.mxu3 }
 0x10a   :  { %v194_v29 = vpop.f32.mrf.mxu0  ;;  %v214_v2 = vpop.f32.mrf.mxu1 }
 0x10c   :  { %5545 = vmatmul.msk.f32.vlgmr.msrb.gmra.mxu0 %vm93_vm1, %v6647_v48  ;;  %5546 = vmatmul.msk.f32.vlgmr.msrb.gmra.mxu1 %vm93_vm1, %v6647_v48  ;;  %v2116_v48 = vsel %vm2115_vm9, %v5929_v35, %v5930_v34  ;;  %v2359_v34 = vld [vmem:[%s7707_s0 + $0x40] sm:$0xff]  ;;  %v2360_v35 = vld [vmem:[%s7707_s0 + $0x48] sm:$0xff] }
 0x10d   :  { %2016 = vmatpush.msrb.mxu0 %v1864_v12  ;;  %2036 = vmatpush.msrb.mxu1 %v1865_v31 }
 0x10e   :  { %5552 = vmatmul.msk.f32.vlgmr.msra.gmra.mxu2 %vm93_vm1, %v6680_v17  ;;  %5553 = vmatmul.msk.f32.vlgmr.msra.gmra.mxu3 %vm93_vm1, %v6680_v17 }
 0x10f   :  { %2194 = vmatpush.msra.mxu2 %v2118_v32  ;;  %2214 = vmatpush.msra.mxu3 %v2119_v33  ;;  %v2353_v33 = vld [vmem:[%s7707_s0 + $0x10] sm:$0xff] }
 0x111   :  { %v360_v42 = vpop.f32.mrf.mxu2  ;;  %v380_v43 = vpop.f32.mrf.mxu3 }
 0x112   :  { %v6708_v44 = vadd.f32 %v360_v42, %v114_v1  ;;  %v6710_v45 = vadd.f32 %v380_v43, %v134_v13  ;;  %v274_v46 = vpop.f32.mrf.mxu0  ;;  %v294_v47 = vpop.f32.mrf.mxu1  ;;  %v5944_v1 = vunpack.i.l.bf16 %v5943_v63  ;;  %v2357_v42 = vld [vmem:[%s7707_s0 + $0x30] sm:$0xff]  ;;  %v2358_v43 = vld [vmem:[%s7707_s0 + $0x38] sm:$0xff] }
 0x114   :  { %5550 = vmatmul.msk.f32.vlgmr.msra.gmra.mxu0 %vm93_vm1, %v6680_v17  ;;  %5551 = vmatmul.msk.f32.vlgmr.msra.gmra.mxu1 %vm93_vm1, %v6680_v17  ;;  %v2124_v20 = vsel %vm2115_vm9, %v5940_v4, %v5944_v1  ;;  %v2125_v21 = vsel %vm2115_vm9, %v5944_v1, %v5945_v0 }
 0x115   :  { %2154 = vmatpush.msra.mxu0 %v2116_v48  ;;  %2174 = vmatpush.msra.mxu1 %v2117_v16 }
 0x116   :  { %5556 = vmatmul.msk.f32.vlgmr.msrb.gmra.mxu2 %vm93_vm1, %v6680_v17  ;;  %5557 = vmatmul.msk.f32.vlgmr.msrb.gmra.mxu3 %vm93_vm1, %v6680_v17 }
 0x117   :  { %2274 = vmatpush.msrb.mxu2 %v2122_v49  ;;  %2294 = vmatpush.msrb.mxu3 %v2123_v50  ;;  %v5948_v49 = vpop.permute.xlu0 %5947 }
 0x118   :  { %v5949_v50 = vunpack.i.l.bf16 %v5948_v49 }
 0x119   :  { %v440_v52 = vpop.f32.mrf.mxu2  ;;  %v460_v53 = vpop.f32.mrf.mxu3 }
 0x11a   :  { %v6724_v54 = vadd.f32 %v440_v52, %v194_v29  ;;  %v6726_v55 = vadd.f32 %v460_v53, %v214_v2  ;;  %v400_v58 = vpop.f32.mrf.mxu0  ;;  %v420_v59 = vpop.f32.mrf.mxu1 }
 0x11b   :  { %v401_v24 = vadd.f32 %v400_v58, %v6671_v10  ;;  %v421_v6 = vadd.f32 %v420_v59, %v6673_v3  ;;  %v2354_v10 = vld [vmem:[%s7707_s0 + $0x18] sm:$0xff]  ;;  %v5569_v3 = vld [vmem:[%s7709_s2 + $0x48] sm:$0xff]  ;;  %v6841_v58 = vld [vmem:[%s7709_s2 + $0x50] sm:$0xff]  ;;  %v5958_v59 = vpop.permute.xlu2 %5957 }
 0x11c   :  { %5554 = vmatmul.msk.f32.vlgmr.msrb.gmra.mxu0 %vm93_vm1, %v6680_v17  ;;  %5555 = vmatmul.msk.f32.vlgmr.msrb.gmra.mxu1 %vm93_vm1, %v6680_v17  ;;  %v5959_v63 = vunpack.i.l.bf16 %v5958_v59 }
 0x11d   :  { %2234 = vmatpush.msrb.mxu0 %v2120_v60  ;;  %2254 = vmatpush.msrb.mxu1 %v2121_v61  ;;  %v3069_v61 = vld [vmem:[%s7710_s3] sm:$0xff] }
 0x11e   :  { %5561 = vmatmul.msk.f32.vlgmr.msra.gmra.mxu2 %vm93_vm1, %v5558_v62  ;;  %5562 = vmatmul.msk.f32.vlgmr.msra.gmra.mxu3 %vm93_vm1, %v5558_v62 }
 0x11f   :  { %2379 = vmatpush.msra.mxu2 %v2351_v5  ;;  %2399 = vmatpush.msra.mxu3 %v2352_v11 }
 0x121   :  { %v520_v13 = vpop.f32.mrf.mxu2  ;;  %v540_v14 = vpop.f32.mrf.mxu3 }
 0x122   :  { %v6745_v15 = vadd.f32 %v520_v13, %v274_v46  ;;  %v6747_v17 = vadd.f32 %v540_v14, %v294_v47  ;;  %v6749_v18 = vpop.f32.mrf.mxu0  ;;  %v6751_v19 = vpop.f32.mrf.mxu1 }
 0x123   :  { %v5963_v60 = vpop.permute.xlu0 %5962 }
 0x124   :  { %5559 = vmatmul.msk.f32.vlgmr.msra.gmra.mxu0 %vm93_vm1, %v5558_v62  ;;  %5560 = vmatmul.msk.f32.vlgmr.msra.gmra.mxu1 %vm93_vm1, %v5558_v62  ;;  %v5964_v5 = vunpack.i.l.bf16 %v5963_v60 }
 0x125   :  { %2314 = vmatpush.msra.mxu0 %v2124_v20  ;;  %2334 = vmatpush.msra.mxu1 %v2125_v21  ;;  %v5960_v20 = vunpack.i.h.bf16 %v5958_v59 }
 0x126   :  { %5565 = vmatmul.msk.f32.vlgmr.msrb.gmra.mxu2 %vm93_vm1, %v5558_v62  ;;  %5566 = vmatmul.msk.f32.vlgmr.msrb.gmra.mxu3 %vm93_vm1, %v5558_v62  ;;  %v2841_v14 = vsel %vm2835_vm10, %v5959_v63, %v5964_v5 }
 0x127   :  { %2459 = vmatpush.msrb.mxu2 %v2355_v22  ;;  %2479 = vmatpush.msrb.mxu3 %v2356_v23  ;;  %v5965_v23 = vunpack.i.h.bf16 %v5963_v60 }
 0x129   :  { %v648_v25 = vpop.f32.mrf.mxu2  ;;  %v668_v29 = vpop.f32.mrf.mxu3 }
 0x12a   :  { %v6767_v2 = vadd.f32 %v648_v25, %v401_v24  ;;  %v6769_v12 = vadd.f32 %v668_v29, %v421_v6  ;;  %v6771_v31 = vpop.f32.mrf.mxu0  ;;  %v6773_v32 = vpop.f32.mrf.mxu1 }
 0x12b   :  { %v5968_v21 = vpop.permute.xlu2 %5967 }
 0x12c   :  { %5563 = vmatmul.msk.f32.vlgmr.msrb.gmra.mxu0 %vm93_vm1, %v5558_v62  ;;  %5564 = vmatmul.msk.f32.vlgmr.msrb.gmra.mxu1 %vm93_vm1, %v5558_v62  ;;  %v5970_v22 = vunpack.i.h.bf16 %v5968_v21 }
 0x12d   :  { %2419 = vmatpush.msrb.mxu0 %v2353_v33  ;;  %2439 = vmatpush.msrb.mxu1 %v2354_v10  ;;  %v5591_v10 = vld [vmem:[%s7709_s2 + $0x58] sm:$0xff] }
 0x12e   :  { %5570 = vmatmul.msk.f32.vlgmr.msra.gmra.mxu2 %vm93_vm1, %v5569_v3  ;;  %5571 = vmatmul.msk.f32.vlgmr.msra.gmra.mxu3 %vm93_vm1, %v5569_v3 }
 0x12f   :  { %2539 = vmatpush.msra.mxu2 %v2359_v34  ;;  %2559 = vmatpush.msra.mxu3 %v2360_v35  ;;  %v5969_v35 = vunpack.i.l.bf16 %v5968_v21 }
 0x131   :  { %v6794_v36 = vpop.f32.mrf.mxu2  ;;  %v6796_v4 = vpop.f32.mrf.mxu3 }
 0x132   :  { %v6798_v40 = vpop.f32.mrf.mxu0  ;;  %v6800_v41 = vpop.f32.mrf.mxu1 }
 0x134   :  { %5567 = vmatmul.msk.f32.vlgmr.msra.gmra.mxu0 %vm93_vm1, %v5558_v62  ;;  %5568 = vmatmul.msk.f32.vlgmr.msra.gmra.mxu1 %vm93_vm1, %v5558_v62 }
 0x135   :  { %2499 = vmatpush.msra.mxu0 %v2357_v42  ;;  %2519 = vmatpush.msra.mxu1 %v2358_v43 }
 0x136   :  { %5574 = vmatmul.msk.f32.vlgmr.msrb.gmra.mxu2 %vm93_vm1, %v5569_v3  ;;  %5575 = vmatmul.msk.f32.vlgmr.msrb.gmra.mxu3 %vm93_vm1, %v5569_v3 }
 0x137   :  { %2634 = vmatpush.msrb.mxu2 %v6509_v27  ;;  %2654 = vmatpush.msrb.mxu3 %v6512_v30  ;;  %v5953_v27 = vpop.permute.xlu1 %5952  ;;  %v5950_v30 = vunpack.i.h.bf16 %v5948_v49 }
 0x138   :  { %v5954_v51 = vunpack.i.l.bf16 %v5953_v27  ;;  %v5955_v62 = vunpack.i.h.bf16 %v5953_v27 }
 0x139   :  { %v6814_v46 = vpop.f32.mrf.mxu2  ;;  %v6816_v47 = vpop.f32.mrf.mxu3 }
 0x13a   :  { %v6818_v48 = vpop.f32.mrf.mxu0  ;;  %v6820_v16 = vpop.f32.mrf.mxu1  ;;  %v2840_v13 = vsel %vm2835_vm10, %v5955_v62, %v5959_v63  ;;  %v2838_v29 = vsel %vm2835_vm10, %v5954_v51, %v5960_v20  ;;  %v2839_v33 = vsel %vm2835_vm10, %v5960_v20, %v5955_v62 }
 0x13c   :  { %5572 = vmatmul.msk.f32.vlgmr.msrb.gmra.mxu0 %vm93_vm1, %v5569_v3  ;;  %5573 = vmatmul.msk.f32.vlgmr.msrb.gmra.mxu1 %vm93_vm1, %v5569_v3 }
 0x13d   :  { %2594 = vmatpush.msrb.mxu0 %v6524_v8  ;;  %2614 = vmatpush.msrb.mxu1 %v6527_v37 }
 0x13e   :  { %5578 = vmatmul.msk.f32.vlgmr.msra.gmra.mxu2 %vm93_vm1, %v5569_v3  ;;  %5579 = vmatmul.msk.f32.vlgmr.msra.gmra.mxu3 %vm93_vm1, %v5569_v3 }
 0x13f   :  { %2714 = vmatpush.msra.mxu2 %v6534_v38  ;;  %2734 = vmatpush.msra.mxu3 %v6537_v39  ;;  %v2836_v38 = vsel %vm2835_vm10, %v5949_v50, %v5950_v30  ;;  %v2837_v39 = vsel %vm2835_vm10, %v5950_v30, %v5954_v51  ;;  %v2832_v24 = vpop.permute.xlu1 %2831  ;;  %v2842_v30 = vsel %vm2835_vm10, %v5964_v5, %v5969_v35 }
 0x140   :  { %v2845_v34 = vsel %vm2835_vm10, %v2832_v24, %v5970_v22  ;;  %v2843_v50 = vsel %vm2835_vm10, %v5969_v35, %v5965_v23 }
 0x141   :  { %v6830_v52 = vpop.f32.mrf.mxu2  ;;  %v6832_v53 = vpop.f32.mrf.mxu3 }
 0x142   :  { %v6834_v8 = vpop.f32.mrf.mxu0  ;;  %v6836_v37 = vpop.f32.mrf.mxu1 }
 0x144   :  { %5576 = vmatmul.msk.f32.vlgmr.msra.gmra.mxu0 %vm93_vm1, %v5569_v3  ;;  %5577 = vmatmul.msk.f32.vlgmr.msra.gmra.mxu1 %vm93_vm1, %v5569_v3  ;;  %v2844_v3 = vsel %vm2835_vm10, %v5965_v23, %v2832_v24 }
 0x145   :  { %2674 = vmatpush.msra.mxu0 %v6553_v7  ;;  %2694 = vmatpush.msra.mxu1 %v6556_v9  ;;  %v6209_v7 = vmov 0  }
 0x146   :  { %5583 = vmatmul.msk.f32.vlgmr.msrb.gmra.mxu2 %vm93_vm1, %v6841_v58  ;;  %5584 = vmatmul.msk.f32.vlgmr.msrb.gmra.mxu3 %vm93_vm1, %v6841_v58 }
 0x147   :  { %2874 = vmatpush.msrb.mxu2 %v2836_v38  ;;  %2894 = vmatpush.msrb.mxu3 %v2837_v39 }
 0x148   :  { %5971 = vset.pattern.permute.xlu0 %v6209_v7  ;;  %6172 = vset.pattern.permute.xlu2 %v6209_v7 }
 0x149   :  { %v6856_v9 = vpop.f32.mrf.mxu2  ;;  %v6858_v11 = vpop.f32.mrf.mxu3  ;;  %3072 = vperm.xlu0 %5971, %v3069_v61  }
 0x14a   :  { %v6860_v0 = vpop.f32.mrf.mxu0  ;;  %v6862_v1 = vpop.f32.mrf.mxu1 }
 0x14c   :  { %5581 = vmatmul.msk.f32.vlgmr.msrb.gmra.mxu0 %vm93_vm1, %v6841_v58  ;;  %5582 = vmatmul.msk.f32.vlgmr.msrb.gmra.mxu1 %vm93_vm1, %v6841_v58 }
 0x14d   :  { %2754 = vmatpush.msrb.mxu0 %v6579_v57  ;;  %2774 = vmatpush.msrb.mxu1 %v6576_v56 }
 0x14e   :  { %5587 = vmatmul.msk.f32.vlgmr.msra.gmra.mxu2 %vm93_vm1, %v6841_v58  ;;  %5588 = vmatmul.msk.f32.vlgmr.msra.gmra.mxu3 %vm93_vm1, %v6841_v58 }
 0x14f   :  { %2954 = vmatpush.msra.mxu2 %v2840_v13  ;;  %2974 = vmatpush.msra.mxu3 %v2841_v14 }
 0x151   :  { %v6876_v6 = vpop.f32.mrf.mxu2  ;;  %v6878_v25 = vpop.f32.mrf.mxu3 }
 0x152   :  { %v6880_v57 = vpop.f32.mrf.mxu0  ;;  %v6882_v56 = vpop.f32.mrf.mxu1 }
 0x154   :  { %5585 = vmatmul.msk.f32.vlgmr.msra.gmra.mxu0 %vm93_vm1, %v6841_v58  ;;  %5586 = vmatmul.msk.f32.vlgmr.msra.gmra.mxu1 %vm93_vm1, %v6841_v58 }
 0x155   :  { %2914 = vmatpush.msra.mxu0 %v2838_v29  ;;  %2934 = vmatpush.msra.mxu1 %v2839_v33 }
 0x156   :  { %5592 = vmatmul.msk.f32.vlgmr.msrb.gmra.mxu2 %vm93_vm1, %v5591_v10  ;;  %5593 = vmatmul.msk.f32.vlgmr.msrb.gmra.mxu3 %vm93_vm1, %v5591_v10 }
 0x157   :  { %3034 = vmatpush.msrb.mxu2 %v2844_v3  ;;  %3054 = vmatpush.msrb.mxu3 %v2845_v34 }
 0x159   :  { %v6897_v42 = vpop.f32.mrf.mxu2  ;;  %v6899_v43 = vpop.f32.mrf.mxu3 }
 0x15a   :  { %v6901_v49 = vpop.f32.mrf.mxu0  ;;  %v6903_v27 = vpop.f32.mrf.mxu1 }
 0x15c   :  { %5589 = vmatmul.msk.f32.vlgmr.msrb.gmra.mxu0 %vm93_vm1, %v6841_v58  ;;  %5590 = vmatmul.msk.f32.vlgmr.msrb.gmra.mxu1 %vm93_vm1, %v6841_v58 }
 0x15d   :  { %2994 = vmatpush.msrb.mxu0 %v2842_v30  ;;  %3014 = vmatpush.msrb.mxu1 %v2843_v50 }
 0x15e   :  { %5596 = vmatmul.msk.f32.vlgmr.msra.gmra.mxu2 %vm93_vm1, %v5591_v10  ;;  %5597 = vmatmul.msk.f32.vlgmr.msra.gmra.mxu3 %vm93_vm1, %v5591_v10 }
 0x161   :  { %v6913_v51 = vpop.f32.mrf.mxu2  ;;  %v6915_v38 = vpop.f32.mrf.mxu3 }
 0x162   :  { %v6917_v39 = vpop.f32.mrf.mxu0  ;;  %v6919_v59 = vpop.f32.mrf.mxu1 }
 0x164   :  { %5594 = vmatmul.msk.f32.vlgmr.msra.gmra.mxu0 %vm93_vm1, %v5591_v10  ;;  %5595 = vmatmul.msk.f32.vlgmr.msra.gmra.mxu1 %vm93_vm1, %v5591_v10 }
 0x166   :  { %5600 = vmatmul.msk.f32.vlgmr.msrb.gmra.mxu2 %vm93_vm1, %v5591_v10  ;;  %5601 = vmatmul.msk.f32.vlgmr.msrb.gmra.mxu3 %vm93_vm1, %v5591_v10 }
 0x169   :  { %v6925_v58 = vpop.f32.mrf.mxu2  ;;  %v6927_v60 = vpop.f32.mrf.mxu3 }
 0x16a   :  { %v6929_v61 = vpop.f32.mrf.mxu0  ;;  %v6931_v62 = vpop.f32.mrf.mxu1 }
 0x16c   :  { %5598 = vmatmul.msk.f32.vlgmr.msrb.gmra.mxu0 %vm93_vm1, %v5591_v10  ;;  %5599 = vmatmul.msk.f32.vlgmr.msrb.gmra.mxu1 %vm93_vm1, %v5591_v10 }
 0x171   :  { %v6935_v63 = vpop.f32.mrf.mxu2  ;;  %v6937_v5 = vpop.f32.mrf.mxu3 }
 0x172   :  { %7714 = vst [vmem:[#allocation6_spill] sm:$0xff] %v6937_v5  ;;  %v6939_v7 = vpop.f32.mrf.mxu0  ;;  %v6941_v13 = vpop.f32.mrf.mxu1 }
 0x173   :  { %7715 = vst [vmem:[#allocation7_spill] sm:$0xff] %v6939_v7 }
 0x174   :  { %7716 = vst [vmem:[#allocation8_spill] sm:$0xff] %v6941_v13 }
 0x179   :  { %v6943_v14 = vpop.f32.mrf.mxu2  ;;  %v6945_v20 = vpop.f32.mrf.mxu3 }
 0x17a   :  { %7717 = vst [vmem:[#allocation9_spill] sm:$0xff] %v6943_v14  ;;  %v1640_v21 = vpop.f32.mrf.mxu0  ;;  %v1660_v22 = vpop.f32.mrf.mxu1 }
 0x17b   :  { %7718 = vst [vmem:[#allocation10_spill] sm:$0xff] %v6945_v20 }
 0x181   :  { %v6947_v23 = vpop.f32.mrf.mxu2  ;;  %v6949_v24 = vpop.f32.mrf.mxu3 }
 0x182   :  { %7719 = vst [vmem:[#allocation11_spill] sm:$0xff] %v6947_v23  ;;  %v6951_v29 = vpop.f32.mrf.mxu0  ;;  %v6953_v33 = vpop.f32.mrf.mxu1 }
 0x183   :  { %7720 = vst [vmem:[#allocation12_spill] sm:$0xff] %v6949_v24 }
 0x184   :  { %7721 = vst [vmem:[#allocation13_spill] sm:$0xff] %v6951_v29 }
 0x185   :  { %7722 = vst [vmem:[#allocation14_spill] sm:$0xff] %v6953_v33 }
 0x189   :  { %v6955_v10 = vpop.f32.mrf.mxu2  ;;  %v6957_v3 = vpop.f32.mrf.mxu3 }
 0x18a   :  { %v6959_v34 = vpop.f32.mrf.mxu0  ;;  %v6961_v35 = vpop.f32.mrf.mxu1 }
 0x18b   :  { %7723 = vst [vmem:[#allocation15_spill] sm:$0xff] %v6959_v34 }
 0x18c   :  { %7724 = vst [vmem:[#allocation16_spill] sm:$0xff] %v6961_v35 }
 0x191   :  { %v6963_v30 = vpop.f32.mrf.mxu2  ;;  %v6965_v50 = vpop.f32.mrf.mxu3 }
 0x192   :  { %7725 = vst [vmem:[#allocation17_spill] sm:$0xff] %v6963_v30  ;;  %v6967_v20 = vpop.f32.mrf.mxu0  ;;  %v6969_v23 = vpop.f32.mrf.mxu1 }
 0x193   :  { %7726 = vst [vmem:[#allocation18_spill] sm:$0xff] %v6965_v50 }
 0x194   :  { %7727 = vst [vmem:[#allocation19_spill] sm:$0xff] %v6967_v20 }
 0x195   :  { %7728 = vst [vmem:[#allocation20_spill] sm:$0xff] %v6969_v23 }
 0x199   :  { %v6971_v24 = vpop.f32.mrf.mxu2  ;;  %v6973_v14 = vpop.f32.mrf.mxu3 }
 0x19a   :  { %7729 = vst [vmem:[#allocation21_spill] sm:$0xff] %v6971_v24  ;;  %v6975_v13 = vpop.f32.mrf.mxu0  ;;  %v6977_v33 = vpop.f32.mrf.mxu1 }
 0x19b   :  { %7730 = vst [vmem:[#allocation22_spill] sm:$0xff] %v6973_v14 }
 0x19c   :  { %7731 = vst [vmem:[#allocation23_spill] sm:$0xff] %v6975_v13 }
 0x19d   :  { %7732 = vst [vmem:[#allocation24_spill] sm:$0xff] %v6977_v33 }
 0x1a1   :  { %v6979_v29 = vpop.f32.mrf.mxu2  ;;  %v6981_v34 = vpop.f32.mrf.mxu3 }
 0x1a2   :  { %7733 = vst [vmem:[#allocation25_spill] sm:$0xff] %v6979_v29  ;;  %v2156_v35 = vpop.f32.mrf.mxu0  ;;  %v2176_v30 = vpop.f32.mrf.mxu1 }
 0x1a3   :  { %7734 = vst [vmem:[#allocation26_spill] sm:$0xff] %v6981_v34 }
 0x1a9   :  { %v6983_v7 = vpop.f32.mrf.mxu2  ;;  %v6985_v50 = vpop.f32.mrf.mxu3 }
 0x1aa   :  { %7735 = vst [vmem:[#allocation27_spill] sm:$0xff] %v6983_v7  ;;  %v6987_v20 = vpop.f32.mrf.mxu0  ;;  %v6989_v23 = vpop.f32.mrf.mxu1 }
 0x1ab   :  { %7736 = vst [vmem:[#allocation28_spill] sm:$0xff] %v6985_v50 }
 0x1ac   :  { %7737 = vst [vmem:[#allocation29_spill] sm:$0xff] %v6987_v20 }
 0x1ad   :  { %7738 = vst [vmem:[#allocation30_spill] sm:$0xff] %v6989_v23 }
 0x1b1   :  { %v6991_v24 = vpop.f32.mrf.mxu2  ;;  %v6993_v14 = vpop.f32.mrf.mxu3 }
 0x1b2   :  { %7739 = vst [vmem:[#allocation31_spill] sm:$0xff] %v6991_v24  ;;  %v6995_v13 = vpop.f32.mrf.mxu0  ;;  %v6997_v33 = vpop.f32.mrf.mxu1 }
 0x1b3   :  { %7740 = vst [vmem:[#allocation32_spill] sm:$0xff] %v6995_v13  ;;  %v791_v13 = vadd.f32 %v6771_v31, %v6708_v44  ;;  %v795_v31 = vadd.f32 %v6798_v40, %v6724_v54 }
 0x1b4   :  { %7741 = vst [vmem:[#allocation33_spill] sm:$0xff] %v6997_v33  ;;  %v792_v33 = vadd.f32 %v6773_v32, %v6710_v45  ;;  %v501_v45 = vadd.f32 %v6751_v19, %v6694_v28  ;;  %v800_v28 = vadd.f32 %v6820_v16, %v6747_v17 }
 0x1b5   :  { %v1053_v19 = vadd.f32 %v6830_v52, %v795_v31  ;;  %v7758_v31 = vld [vmem:[#allocation11_spill] sm:$0xff] }
 0x1b9   :  { %v6999_v29 = vpop.f32.mrf.mxu2  ;;  %v7001_v34 = vpop.f32.mrf.mxu3 }
 0x1ba   :  { %7742 = vst [vmem:[#allocation34_spill] sm:$0xff] %v6999_v29  ;;  %v7003_v5 = vpop.f32.mrf.mxu0  ;;  %v7005_v7 = vpop.f32.mrf.mxu1 }
 0x1bb   :  { %7743 = vst [vmem:[#allocation35_spill] sm:$0xff] %v7001_v34 }
 0x1bc   :  { %7744 = vst [vmem:[#allocation36_spill] sm:$0xff] %v7003_v5 }
 0x1bd   :  { %7745 = vst [vmem:[#allocation37_spill] sm:$0xff] %v7005_v7  ;;  %v1049_v7 = vadd.f32 %v6814_v46, %v791_v13  ;;  %v796_v46 = vadd.f32 %v6800_v41, %v6726_v55  ;;  %v1052_v41 = vadd.f32 %v6836_v37, %v6769_v12 }
 0x1bf   :  { %v1054_v54 = vadd.f32 %v6832_v53, %v796_v46  ;;  %v1310_v37 = vadd.f32 %v6878_v25, %v1052_v41 }
 0x1c1   :  { %v7007_v50 = vpop.f32.mrf.mxu2  ;;  %v7009_v20 = vpop.f32.mrf.mxu3 }
 0x1c2   :  { %7746 = vst [vmem:[#allocation38_spill] sm:$0xff] %v7007_v50  ;;  %v7011_v23 = vpop.f32.mrf.mxu0  ;;  %v7013_v24 = vpop.f32.mrf.mxu1  ;;  %v1050_v50 = vadd.f32 %v6816_v47, %v792_v33 }
 0x1c3   :  { %7747 = vst [vmem:[#allocation39_spill] sm:$0xff] %v7009_v20 }
 0x1c4   :  { %7748 = vst [vmem:[#allocation40_spill] sm:$0xff] %v7011_v23  ;;  %v481_v23 = vadd.f32 %v6749_v18, %v6692_v26  ;;  %v1308_v44 = vadd.f32 %v6882_v56, %v1050_v50  ;;  %v798_v26 = vadd.f32 %v6796_v4, %v501_v45  ;;  %v799_v18 = vadd.f32 %v6818_v48, %v6745_v15 }
 0x1c5   :  { %7749 = vst [vmem:[#allocation41_spill] sm:$0xff] %v7013_v24  ;;  %v1307_v24 = vadd.f32 %v6880_v57, %v1049_v7  ;;  %v1058_v57 = vadd.f32 %v6858_v11, %v800_v28  ;;  %v1311_v11 = vadd.f32 %v6901_v49, %v1053_v19  ;;  %v7089_v28 = vld [vmem:[%s7708_s1] sm:$0xff] }
 0x1c6   :  { %v797_v32 = vadd.f32 %v6794_v36, %v481_v23  ;;  %v1566_v13 = vadd.f32 %v6915_v38, %v1308_v44  ;;  %v1051_v36 = vadd.f32 %v6834_v8, %v6767_v2  ;;  %v1057_v4 = vadd.f32 %v6856_v9, %v799_v18  ;;  %v7751_v23 = vld [vmem:[#allocation6_spill] sm:$0xff]  ;;  %v7080_v44 = vpop.permute.xlu0 %3072  ;;  %v7761_v19 = vld [vmem:[#allocation12_spill] sm:$0xff] }
 0x1c7   :  { %v1565_v47 = vadd.f32 %v6913_v51, %v1307_v24  ;;  %v1056_v16 = vadd.f32 %v6862_v1, %v798_v26  ;;  %v1316_v38 = vadd.f32 %v6919_v59, %v1058_v57  ;;  %v1569_v7 = vadd.f32 %v6925_v58, %v1311_v11  ;;  %v7752_v24 = vld [vmem:[#allocation7_spill] sm:$0xff] }
 0x1c8   :  { %v1824_v40 = vadd.f32 %v1660_v22, %v1566_v13  ;;  %v1055_v15 = vadd.f32 %v6860_v0, %v797_v32  ;;  %v1309_v52 = vadd.f32 %v6876_v6, %v1051_v36  ;;  %v1312_v0 = vadd.f32 %v6903_v27, %v1054_v54  ;;  %v7750_v22 = vld [vmem:[#allocation31_spill] sm:$0xff]  ;;  %v7759_v32 = vld [vmem:[#allocation17_spill] sm:$0xff] }
 0x1c9   :  { %v7019_v29 = vpop.f32.mrf.mxu2  ;;  %v7021_v34 = vpop.f32.mrf.mxu3  ;;  %v1823_v55 = vadd.f32 %v1640_v21, %v1565_v47  ;;  %v1314_v56 = vadd.f32 %v6899_v43, %v1056_v16  ;;  %v1315_v1 = vadd.f32 %v6917_v39, %v1057_v4  ;;  %v1574_v39 = vadd.f32 %v7751_v23, %v1316_v38  ;;  %v7760_v47 = vld [vmem:[#allocation18_spill] sm:$0xff]  ;;  %v7763_v4 = vld [vmem:[#allocation19_spill] sm:$0xff] }
 0x1ca   :  { %v2596_v5 = vpop.f32.mrf.mxu0  ;;  %v2616_v20 = vpop.f32.mrf.mxu1  ;;  %v2082_v53 = vadd.f32 %v6957_v3, %v1824_v40  ;;  %v1313_v9 = vadd.f32 %v6897_v42, %v1055_v15  ;;  %v1570_v21 = vadd.f32 %v6927_v60, %v1312_v0  ;;  %v1567_v25 = vadd.f32 %v6929_v61, %v1309_v52  ;;  %v7754_v3 = vld [vmem:[#allocation14_spill] sm:$0xff]  ;;  %v7764_v15 = vld [vmem:[#allocation20_spill] sm:$0xff]  ;;  %v7765_v52 = vld [vmem:[#allocation29_spill] sm:$0xff] }
 0x1cb   :  { %v2081_v2 = vadd.f32 %v6955_v10, %v1823_v55  ;;  %v1568_v42 = vadd.f32 %v6931_v62, %v1310_v37  ;;  %v1573_v49 = vadd.f32 %v6935_v63, %v1315_v1  ;;  %v7753_v10 = vld [vmem:[#allocation13_spill] sm:$0xff]  ;;  %v7757_v63 = vld [vmem:[#allocation10_spill] sm:$0xff]  ;;  %v3099_v0 = vperm.slane %v7089_v28, 0  ;;  %v7767_v1 = vld [vmem:[#allocation16_spill] sm:$0xff] }
 0x1cc   :  { %v2340_v6 = vadd.f32 %v2176_v30, %v2082_v53  ;;  %v1571_v33 = vadd.f32 %v7752_v24, %v1313_v9  ;;  %v1827_v59 = vadd.f32 %v7753_v10, %v1569_v7  ;;  %v1828_v58 = vadd.f32 %v7754_v3, %v1570_v21  ;;  %v7756_v30 = vld [vmem:[#allocation9_spill] sm:$0xff]  ;;  %v7766_v53 = vld [vmem:[#allocation30_spill] sm:$0xff] }
 0x1cd   :  { %v2339_v51 = vadd.f32 %v2156_v35, %v2081_v2  ;;  %v7755_v35 = vld [vmem:[#allocation8_spill] sm:$0xff]  ;;  %v1825_v61 = vadd.f32 %v7756_v30, %v1567_v25  ;;  %v1826_v45 = vadd.f32 %v7757_v63, %v1568_v42  ;;  %v7769_v7 = vld [vmem:[#allocation25_spill] sm:$0xff]  ;;  %v7770_v25 = vld [vmem:[#allocation26_spill] sm:$0xff] }
 0x1ce   :  { %v2565_v43 = vadd.f32 %v6993_v14, %v2340_v6  ;;  %v1572_v60 = vadd.f32 %v7755_v35, %v1314_v56  ;;  %v1829_v14 = vadd.f32 %v7758_v31, %v1571_v33  ;;  %v2085_v46 = vadd.f32 %v7759_v32, %v1827_v59  ;;  %v7768_v6 = vld [vmem:[#allocation21_spill] sm:$0xff]  ;;  %v7773_v33 = vld [vmem:[#allocation23_spill] sm:$0xff]  ;;  %v7774_v59 = vld [vmem:[#allocation24_spill] sm:$0xff] }
 0x1cf   :  { %v2564_v27 = vadd.f32 %v7750_v22, %v2339_v51  ;;  %v2086_v13 = vadd.f32 %v7760_v47, %v1828_v58  ;;  %v2083_v57 = vadd.f32 %v7763_v4, %v1825_v61  ;;  %v2084_v16 = vadd.f32 %v7764_v15, %v1826_v45  ;;  %v7775_v58 = vld [vmem:[#allocation36_spill] sm:$0xff]  ;;  %v7777_v63 = vld [vmem:[#allocation22_spill] sm:$0xff]  ;;  %v7778_v31 = vld [vmem:[#allocation27_spill] sm:$0xff] }
 0x1d0   :  { %v2780_v62 = vadd.f32 %v2616_v20, %v2565_v43  ;;  %v7762_v20 = vld [vmem:[#allocation15_spill] sm:$0xff]  ;;  %v2343_v2 = vadd.f32 %v7765_v52, %v2085_v46  ;;  %v3100_v56 = vperm.slane %v7089_v28, 1  ;;  %v1832_v51 = vadd.f32 %v7767_v1, %v1574_v39 }
 0x1d1   :  { %v7052_v48 = vpop.f32.mrf.mxu2  ;;  %v7054_v17 = vpop.f32.mrf.mxu3  ;;  %v2779_v50 = vadd.f32 %v2596_v5, %v2564_v27  ;;  %v1830_v5 = vadd.f32 %v7761_v19, %v1572_v60  ;;  %v1831_v54 = vadd.f32 %v7762_v20, %v1573_v49  ;;  %v2344_v37 = vadd.f32 %v7766_v53, %v2086_v13  ;;  %v7771_v49 = vld [vmem:[#allocation34_spill] sm:$0xff]  ;;  %v7772_v27 = vld [vmem:[#allocation35_spill] sm:$0xff]  ;;  %v7776_v60 = vld [vmem:[#allocation37_spill] sm:$0xff] }
 0x1d2   :  { %v2676_v8 = vpop.f32.mrf.mxu0  ;;  %v2696_v12 = vpop.f32.mrf.mxu1  ;;  %v2341_v21 = vadd.f32 %v7769_v7, %v2083_v57  ;;  %v2342_v42 = vadd.f32 %v7770_v25, %v2084_v16  ;;  %v2568_v22 = vadd.f32 %v7771_v49, %v2343_v2  ;;  %v2087_v10 = vadd.f32 %v7773_v33, %v1829_v14 }
 0x1d3   :  { %v2089_v38 = vadd.f32 %v7768_v6, %v1831_v54  ;;  %v2569_v43 = vadd.f32 %v7772_v27, %v2344_v37  ;;  %v2088_v3 = vadd.f32 %v7774_v59, %v1830_v5  ;;  %v2090_v45 = vadd.f32 %v7777_v63, %v1832_v51  ;;  %v7780_v54 = vld [vmem:[#allocation32_spill] sm:$0xff] }
 0x1d4   :  { %v2566_v35 = vadd.f32 %v7775_v58, %v2341_v21  ;;  %v2567_v39 = vadd.f32 %v7776_v60, %v2342_v42  ;;  %v2783_v30 = vadd.f32 %v2676_v8, %v2568_v22  ;;  %v2345_v32 = vadd.f32 %v7778_v31, %v2087_v10  ;;  %v7785_v21 = vld [vmem:[#allocation41_spill] sm:$0xff] }
 0x1d5   :  { %v2784_v61 = vadd.f32 %v2696_v12, %v2569_v43  ;;  %v3103_v15 = vperm.slane %v7089_v28, 4  ;;  %v3104_v52 = vperm.slane %v7089_v28, 5  ;;  %v3101_v53 = vperm.slane %v7089_v28, 2  ;;  %v3096_v58 = vld [vmem:[%s7708_s1 + $0x8] sm:$0x3]  ;;  %s6212_s1 = smov 126  }
 0x1d6   :  { %v2781_v46 = vadd.f32 %v7019_v29, %v2566_v35  ;;  %v2782_v14 = vadd.f32 %v7021_v34, %v2567_v39 }
 0x1d9   :  { %v2876_v26 = vpop.f32.mrf.mxu2  ;;  %v2896_v18 = vpop.f32.mrf.mxu3 }
 0x1da   :  { %v3059_v36 = vadd.f32 %v2876_v26, %v2779_v50  ;;  %v3060_v55 = vadd.f32 %v2896_v18, %v2780_v62  ;;  %v2756_v40 = vpop.f32.mrf.mxu0  ;;  %v2776_v41 = vpop.f32.mrf.mxu1  ;;  %v7779_v26 = vld [vmem:[#allocation28_spill] sm:$0xff] }
 0x1db   :  { %v2346_v18 = vadd.f32 %v7779_v26, %v2088_v3 }
 0x1dc   :  { %v3075_v9 = vadd.f32 %v7080_v44, %v3059_v36  ;;  %v3076_v11 = vadd.f32 %v7080_v44, %v3060_v55  ;;  %v2347_v36 = vadd.f32 %v7780_v54, %v2089_v38  ;;  %v7781_v55 = vld [vmem:[#allocation33_spill] sm:$0xff]  ;;  %v7784_v38 = vld [vmem:[#allocation40_spill] sm:$0xff] }
 0x1dd   :  { %v2348_v4 = vadd.f32 %v7781_v55, %v2090_v45  ;;  %v2570_v7 = vadd.f32 %v7784_v38, %v2345_v32  ;;  %v2571_v25 = vadd.f32 %v7785_v21, %v2346_v18  ;;  %v3107_v45 = vperm.slane %v3096_v58, 0 }
 0x1de   :  { %v3085_v23 = vmax.f32 %v3075_v9, 0.0  ;;  %v3086_v24 = vmax.f32 %v3076_v11, 0.0  ;;  %v3102_v9 = vperm.slane %v7089_v28, 3  ;;  %v7782_v11 = vld [vmem:[#allocation38_spill] sm:$0xff]  ;;  %v3108_v32 = vperm.slane %v3096_v58, 1 }
 0x1df   :  { %v2786_v33 = vadd.f32 %v7054_v17, %v2571_v25  ;;  %v6211_v55 = vmov 0.0  }
 0x1e0   :  { %v7111_v50 = vmul.f32 %v3099_v0, %v3085_v23  ;;  %v7113_v62 = vmul.f32 %v3100_v56, %v3086_v24  ;;  %v2572_v0 = vadd.f32 %v7782_v11, %v2347_v36  ;;  %v7783_v56 = vld [vmem:[#allocation39_spill] sm:$0xff]  ;;  %v2785_v24 = vadd.f32 %v7052_v48, %v2570_v7 }
 0x1e1   :  { %v2956_v47 = vpop.f32.mrf.mxu2  ;;  %v2976_v13 = vpop.f32.mrf.mxu3  ;;  %v2573_v1 = vadd.f32 %v7783_v56, %v2348_v4 }
 0x1e2   :  { %v3063_v19 = vadd.f32 %v2956_v47, %v2783_v30  ;;  %v3064_v5 = vadd.f32 %v2976_v13, %v2784_v61  ;;  %v2916_v8 = vpop.f32.mrf.mxu0  ;;  %v2936_v12 = vpop.f32.mrf.mxu1  ;;  %v7122_v20 = vpack.i.bf16 %v7113_v62, %v7111_v50  ;;  %v2787_v22 = vadd.f32 %v2756_v40, %v2572_v0 }
 0x1e3   :  { %v3061_v57 = vadd.f32 %v2916_v8, %v2781_v46  ;;  %v3062_v29 = vadd.f32 %v2936_v12, %v2782_v14  ;;  %v2788_v27 = vadd.f32 %v2776_v41, %v2573_v1  ;;  %v3105_v14 = vperm.slane %v7089_v28, 6  ;;  %v7231_v1 = vld [vmem:[%s7711_s4] sm:$0xff] }
 0x1e4   :  { %v3079_v34 = vadd.f32 %v7080_v44, %v3063_v19  ;;  %v3080_v16 = vadd.f32 %v7080_v44, %v3064_v5  ;;  %5973 = vrot.lane.b32.xlu1 %v7122_v20, %s6210_s28  ;;  %v3106_v13 = vperm.slane %v7089_v28, 7 }
 0x1e5   :  { %v3077_v2 = vadd.f32 %v7080_v44, %v3061_v57  ;;  %v3078_v37 = vadd.f32 %v7080_v44, %v3062_v29 }
 0x1e6   :  { %v3089_v51 = vmax.f32 %v3079_v34, 0.0  ;;  %v3090_v6 = vmax.f32 %v3080_v16, 0.0 }
 0x1e7   :  { %v3087_v42 = vmax.f32 %v3077_v2, 0.0  ;;  %v3088_v49 = vmax.f32 %v3078_v37, 0.0 }
 0x1e8   :  { %v7140_v43 = vmul.f32 %v3103_v15, %v3089_v51  ;;  %v7142_v23 = vmul.f32 %v3104_v52, %v3090_v6  ;;  %v7213_v15 = vld [vmem:[%s7711_s4 + $0x8] sm:$0xff] }
 0x1e9   :  { %v7146_v10 = vmul.f32 %v3101_v53, %v3087_v42  ;;  %v7148_v59 = vmul.f32 %v3102_v9, %v3088_v49  ;;  %v3036_v3 = vpop.f32.mrf.mxu2  ;;  %v3056_v35 = vpop.f32.mrf.mxu3 }
 0x1ea   :  { %v3067_v40 = vadd.f32 %v3036_v3, %v2787_v22  ;;  %v3068_v41 = vadd.f32 %v3056_v35, %v2788_v27  ;;  %v2996_v60 = vpop.f32.mrf.mxu0  ;;  %v3016_v39 = vpop.f32.mrf.mxu1  ;;  %v7155_v30 = vpack.i.bf16 %v7142_v23, %v7140_v43 }
 0x1eb   :  { %v3065_v48 = vadd.f32 %v2996_v60, %v2785_v24  ;;  %v3066_v17 = vadd.f32 %v3016_v39, %v2786_v33  ;;  %v7159_v61 = vpack.i.bf16 %v7148_v59, %v7146_v10 }
 0x1ec   :  { %v3083_v63 = vadd.f32 %v7080_v44, %v3067_v40  ;;  %v3084_v31 = vadd.f32 %v7080_v44, %v3068_v41  ;;  %5983 = vrot.lane.b32.xlu1 %v7155_v30, %s6210_s28 }
 0x1ed   :  { %v3081_v46 = vadd.f32 %v7080_v44, %v3065_v48  ;;  %v3082_v47 = vadd.f32 %v7080_v44, %v3066_v17  ;;  %5978 = vrot.lane.b32.xlu2 %v7159_v61, %s6210_s28 }
 0x1ee   :  { %v3093_v26 = vmax.f32 %v3083_v63, 0.0  ;;  %v3094_v18 = vmax.f32 %v3084_v31, 0.0 }
 0x1ef   :  { %v3091_v19 = vmax.f32 %v3081_v46, 0.0  ;;  %v3092_v5 = vmax.f32 %v3082_v47, 0.0 }
 0x1f0   :  { %v7171_v8 = vmul.f32 %v3107_v45, %v3093_v26  ;;  %v7173_v12 = vmul.f32 %v3108_v32, %v3094_v18  ;;  %v7300_v45 = vld [vmem:[%s7711_s4 + $0x10] sm:$0xff] }
 0x1f1   :  { %v7175_v54 = vmul.f32 %v3105_v14, %v3091_v19  ;;  %v7177_v36 = vmul.f32 %v3106_v13, %v3092_v5 }
 0x1f2   :  { %v5992_v44 = vpack.i.bf16 %v7173_v12, %v7171_v8  ;;  %v6167_v42 = vpack.i.bf16 0.0, %v7173_v12 }
 0x1f3   :  { %v7183_v28 = vpack.i.bf16 %v7177_v36, %v7175_v54 }
 0x1f4   :  { %5993 = vrot.lane.b32.xlu0 %v5992_v44, %s6210_s28  ;;  %3194 = vrot.lane.b32.xlu1 %v6211_v55, %s6210_s28 }
 0x1f5   :  { %5988 = vrot.lane.b32.xlu2 %v7183_v28, %s6210_s28 }
 0x1fc   :  { %6003 = vrot.lane.b32.xlu0 %v7159_v61, %s6212_s1  ;;  %6008 = vrot.lane.b32.xlu1 %v7155_v30, %s6212_s1 }
 0x1fd   :  { %5998 = vrot.lane.b32.xlu2 %v7122_v20, %s6212_s1 }
 0x204   :  { %6023 = vrot.lane.b32.xlu0 %v5992_v44, %s6212_s1  ;;  %3645 = vrot.lane.b32.xlu1 %v6211_v55, %s6212_s1 }
 0x205   :  { %6013 = vrot.lane.b32.xlu2 %v7183_v28, %s6212_s1 }
 0x20c   :  { %6028 = vrot.lane.b32.xlu0 %v7159_v61, %s6213_s7  ;;  %6033 = vrot.lane.b32.xlu1 %v7155_v30, %s6213_s7 }
 0x20d   :  { %6018 = vrot.lane.b32.xlu2 %v7122_v20, %s6213_s7 }
 0x214   :  { %6048 = vrot.lane.b32.xlu0 %v5992_v44, %s6213_s7  ;;  %3903 = vrot.lane.b32.xlu1 %v6211_v55, %s6213_s7 }
 0x215   :  { %6038 = vrot.lane.b32.xlu2 %v7183_v28, %s6213_s7  ;;  %s5462_s7 = sshll.u32 %s7713_s6, 4  ;;  %s5463_s7 = int_to_ptr.hbm [resolvable:$true] %s5462_s7 }
 0x21c   :  { %6053 = vrot.lane.b32.xlu0 %v7159_v61, %s6214_s8  ;;  %6058 = vrot.lane.b32.xlu1 %v7155_v30, %s6214_s8 }
 0x21d   :  { %6043 = vrot.lane.b32.xlu2 %v7122_v20, %s6214_s8 }
 0x224   :  { %6073 = vrot.lane.b32.xlu0 %v5992_v44, %s6214_s8  ;;  %4161 = vrot.lane.b32.xlu1 %v6211_v55, %s6214_s8 }
 0x225   :  { %6063 = vrot.lane.b32.xlu2 %v7183_v28, %s6214_s8 }
 0x22c   :  { %6078 = vrot.lane.b32.xlu0 %v7159_v61, %s6215_s9  ;;  %6083 = vrot.lane.b32.xlu1 %v7155_v30, %s6215_s9 }
 0x22d   :  { %6068 = vrot.lane.b32.xlu2 %v7122_v20, %s6215_s9 }
 0x234   :  { %6098 = vrot.lane.b32.xlu0 %v5992_v44, %s6215_s9  ;;  %4419 = vrot.lane.b32.xlu1 %v6211_v55, %s6215_s9 }
 0x235   :  { %6088 = vrot.lane.b32.xlu2 %v7183_v28, %s6215_s9 }
 0x23c   :  { %6103 = vrot.lane.b32.xlu0 %v7159_v61, %s6216_s10  ;;  %6108 = vrot.lane.b32.xlu1 %v7155_v30, %s6216_s10 }
 0x23d   :  { %6093 = vrot.lane.b32.xlu2 %v7122_v20, %s6216_s10 }
 0x244   :  { %6123 = vrot.lane.b32.xlu0 %v5992_v44, %s6216_s10  ;;  %4677 = vrot.lane.b32.xlu1 %v6211_v55, %s6216_s10 }
 0x245   :  { %6113 = vrot.lane.b32.xlu2 %v7183_v28, %s6216_s10 }
 0x247   :  { %v5979_v4 = vpop.permute.xlu2 %5978 }
 0x248   :  { %v5981_v57 = vunpack.i.h.bf16 %v5979_v4  ;;  %v5980_v29 = vunpack.i.l.bf16 %v5979_v4 }
 0x24a   :  { %v3199_v34 = vsel %vm3196_vm11, %v5980_v29, %v5981_v57 }
 0x24b   :  { %3275 = vmatpush.msra.mxu2 %v3199_v34  ;;  %v7333_v34 = vld [vmem:[%s7711_s4 + $0x18] sm:$0xff] }
 0x24c   :  { %6128 = vrot.lane.b32.xlu0 %v7159_v61, %s6217_s13  ;;  %6133 = vrot.lane.b32.xlu1 %v7155_v30, %s6217_s13 }
 0x24d   :  { %5605 = vmatmul.msk.f32.vlgmr.msra.gmra.mxu2 %vm93_vm1, %v7213_v15  ;;  %6118 = vrot.lane.b32.xlu2 %v7122_v20, %s6217_s13 }
 0x24f   :  { %v5989_v16 = vpop.permute.xlu2 %5988 }
 0x250   :  { %v5991_v52 = vunpack.i.h.bf16 %v5989_v16  ;;  %v5990_v2 = vunpack.i.l.bf16 %v5989_v16 }
 0x252   :  { %v3203_v53 = vsel %vm3196_vm11, %v5990_v2, %v5991_v52 }
 0x253   :  { %3355 = vmatpush.msrb.mxu2 %v3203_v53 }
 0x254   :  { %6148 = vrot.lane.b32.xlu0 %v5992_v44, %s6217_s13  ;;  %4935 = vrot.lane.b32.xlu1 %v6211_v55, %s6217_s13 }
 0x255   :  { %5609 = vmatmul.msk.f32.vlgmr.msrb.gmra.mxu2 %vm93_vm1, %v7213_v15  ;;  %6138 = vrot.lane.b32.xlu2 %v7183_v28, %s6217_s13 }
 0x256   :  { %3438 = vmatpush.msra.mxu2 %v7111_v50  ;;  %v5974_v37 = vpop.permute.xlu1 %5973 }
 0x257   :  { %v5976_v9 = vunpack.i.h.bf16 %v5974_v37  ;;  %v5975_v11 = vunpack.i.l.bf16 %v5974_v37  ;;  %v7239_v50 = vpop.permute.xlu2 %5998 }
 0x258   :  { %3518 = vmatpush.msrb.mxu2 %v7140_v43 }
 0x259   :  { %v3197_v0 = vsel %vm3196_vm11, %v5975_v11, %v5976_v9  ;;  %v3198_v56 = vsel %vm3196_vm11, %v5976_v9, %v5980_v29 }
 0x25a   :  { %3235 = vmatpush.msra.mxu0 %v3197_v0  ;;  %3255 = vmatpush.msra.mxu1 %v3198_v56 }
 0x25b   :  { %5603 = vmatmul.msk.f32.vlgmr.msra.gmra.mxu0 %vm93_vm1, %v7213_v15  ;;  %5604 = vmatmul.msk.f32.vlgmr.msra.gmra.mxu1 %vm93_vm1, %v7213_v15 }
 0x25c   :  { %6153 = vrot.lane.b32.xlu0 %v7159_v61, %s6218_s16  ;;  %6158 = vrot.lane.b32.xlu1 %v7155_v30, %s6218_s16 }
 0x25d   :  { %5613 = vmatmul.msk.f32.vlgmr.msra.gmra.mxu2 %vm93_vm1, %v7231_v1  ;;  %6143 = vrot.lane.b32.xlu2 %v7122_v20, %s6218_s16 }
 0x25e   :  { %3598 = vmatpush.msra.mxu2 %v7171_v8  ;;  %v5984_v51 = vpop.permute.xlu1 %5983 }
 0x25f   :  { %v5986_v6 = vunpack.i.h.bf16 %v5984_v51  ;;  %v5985_v38 = vunpack.i.l.bf16 %v5984_v51  ;;  %v7259_v22 = vpop.permute.xlu2 %6013 }
 0x260   :  { %v6016_v58 = vunpack.i.h.bf16 %v7259_v22  ;;  %v6015_v35 = vunpack.i.l.bf16 %v7259_v22 }
 0x261   :  { %v3200_v7 = vsel %vm3196_vm11, %v5981_v57, %v5985_v38  ;;  %v3201_v21 = vsel %vm3196_vm11, %v5985_v38, %v5986_v6  ;;  %v3202_v25 = vsel %vm3196_vm11, %v5986_v6, %v5990_v2 }
 0x262   :  { %3295 = vmatpush.msra.mxu3 %v3200_v7  ;;  %3315 = vmatpush.msrb.mxu0 %v3201_v21 }
 0x263   :  { %3335 = vmatpush.msrb.mxu1 %v3202_v25  ;;  %5606 = vmatmul.msk.f32.vlgmr.msra.gmra.mxu3 %vm93_vm1, %v7213_v15 }
 0x264   :  { %5607 = vmatmul.msk.f32.vlgmr.msrb.gmra.mxu0 %vm93_vm1, %v7213_v15  ;;  %5608 = vmatmul.msk.f32.vlgmr.msrb.gmra.mxu1 %vm93_vm1, %v7213_v15 }
 0x265   :  { %5189 = vrot.lane.b32.xlu0 %v7171_v8, %s6218_s16  ;;  %6168 = vrot.lane.b32.xlu1 %v6167_v42, %s6218_s16 }
 0x266   :  { %5617 = vmatmul.msk.f32.vlgmr.msrb.gmra.mxu2 %vm93_vm1, %v7231_v1  ;;  %v5994_v20 = vpop.permute.xlu0 %5993  ;;  %6163 = vrot.lane.b32.xlu2 %v7183_v28, %s6218_s16  ;;  %v3195_v49 = vpop.permute.xlu1 %3194 }
 0x267   :  { %v5996_v27 = vunpack.i.h.bf16 %v5994_v20  ;;  %v5995_v43 = vunpack.i.l.bf16 %v5994_v20  ;;  %v7282_v30 = vpop.permute.xlu2 %6018 }
 0x268   :  { %v6021_v17 = vunpack.i.h.bf16 %v7282_v30  ;;  %v6020_v61 = vunpack.i.l.bf16 %v7282_v30 }
 0x269   :  { %v3206_v24 = vsel %vm3196_vm11, %v5996_v27, %v3195_v49  ;;  %v3204_v33 = vsel %vm3196_vm11, %v5991_v52, %v5995_v43  ;;  %v3205_v3 = vsel %vm3196_vm11, %v5995_v43, %v5996_v27 }
 0x26a   :  { %3375 = vmatpush.msrb.mxu3 %v3204_v33  ;;  %3395 = vmatpush.msra.mxu0 %v3205_v3  ;;  %v3906_v47 = vsel %vm3905_vm13, %v6020_v61, %v6021_v17 }
 0x26b   :  { %3415 = vmatpush.msra.mxu1 %v3206_v24  ;;  %5610 = vmatmul.msk.f32.vlgmr.msrb.gmra.mxu3 %vm93_vm1, %v7213_v15 }
 0x26c   :  { %5611 = vmatmul.msk.f32.vlgmr.msra.gmra.mxu0 %vm93_vm1, %v7213_v15  ;;  %5612 = vmatmul.msk.f32.vlgmr.msra.gmra.mxu1 %vm93_vm1, %v7213_v15 }
 0x26d   :  { %3458 = vmatpush.msra.mxu3 %v7113_v62  ;;  %3478 = vmatpush.msrb.mxu0 %v7146_v10  ;;  %v6001_v62 = vunpack.i.h.bf16 %v7239_v50  ;;  %v6000_v10 = vunpack.i.l.bf16 %v7239_v50 }
 0x26e   :  { %3498 = vmatpush.msrb.mxu1 %v7148_v59  ;;  %v6004_v40 = vpop.permute.xlu0 %6003  ;;  %v6009_v41 = vpop.permute.xlu1 %6008  ;;  %5621 = vmatmul.msk.f32.vlgmr.msra.gmra.mxu2 %vm93_vm1, %v7231_v1  ;;  %v3654_v59 = vsel %vm3647_vm12, %v6015_v35, %v6016_v58 }
 0x26f   :  { %3538 = vmatpush.msrb.mxu3 %v7142_v23  ;;  %3558 = vmatpush.msra.mxu0 %v7175_v54  ;;  %v6006_v60 = vunpack.i.h.bf16 %v6004_v40  ;;  %v6005_v39 = vunpack.i.l.bf16 %v6004_v40  ;;  %v3648_v63 = vsel %vm3647_vm12, %v6000_v10, %v6001_v62  ;;  %v6011_v46 = vunpack.i.h.bf16 %v6009_v41  ;;  %v7305_v13 = vpop.permute.xlu2 %6038  ;;  %v7388_v10 = vld [vmem:[%s7711_s4 + $0x20] sm:$0xff] }
 0x270   :  { %3578 = vmatpush.msra.mxu1 %v7177_v36  ;;  %v6010_v14 = vunpack.i.l.bf16 %v6009_v41  ;;  %v6041_v7 = vunpack.i.h.bf16 %v7305_v13  ;;  %v6040_v21 = vunpack.i.l.bf16 %v7305_v13 }
 0x271   :  { %v3650_v23 = vsel %vm3647_vm12, %v6005_v39, %v6006_v60  ;;  %v3649_v48 = vsel %vm3647_vm12, %v6001_v62, %v6005_v39  ;;  %v3653_v19 = vsel %vm3647_vm12, %v6011_v46, %v6015_v35 }
 0x272   :  { %3726 = vmatpush.msrb.mxu2 %v3650_v23  ;;  %v3651_v26 = vsel %vm3647_vm12, %v6006_v60, %v6010_v14  ;;  %v3652_v18 = vsel %vm3647_vm12, %v6010_v14, %v6011_v46  ;;  %v3912_v22 = vsel %vm3905_vm13, %v6040_v21, %v6041_v7 }
 0x273   :  { %5614 = vmatmul.msk.f32.vlgmr.msra.gmra.mxu3 %vm93_vm1, %v7231_v1 }
 0x274   :  { %3806 = vmatpush.msra.mxu2 %v3654_v59  ;;  %5615 = vmatmul.msk.f32.vlgmr.msrb.gmra.mxu0 %vm93_vm1, %v7231_v1 }
 0x275   :  { %5616 = vmatmul.msk.f32.vlgmr.msrb.gmra.mxu1 %vm93_vm1, %v7231_v1  ;;  %3618 = vmatpush.msra.mxu3 %v7173_v12 }
 0x276   :  { %3686 = vmatpush.msrb.mxu0 %v3648_v63  ;;  %3706 = vmatpush.msrb.mxu1 %v3649_v48  ;;  %v6024_v31 = vpop.permute.xlu0 %6023  ;;  %v3646_v32 = vpop.permute.xlu1 %3645 }
 0x277   :  { %5626 = vmatmul.msk.f32.vlgmr.msrb.gmra.mxu2 %vm93_vm1, %v7300_v45  ;;  %v6026_v36 = vunpack.i.h.bf16 %v6024_v31  ;;  %v6025_v44 = vunpack.i.l.bf16 %v6024_v31  ;;  %v7328_v29 = vpop.permute.xlu2 %6043 }
 0x278   :  { %3944 = vmatpush.msrb.mxu2 %v3906_v47  ;;  %v6046_v33 = vunpack.i.h.bf16 %v7328_v29  ;;  %v6045_v3 = vunpack.i.l.bf16 %v7328_v29 }
 0x279   :  { %v3655_v55 = vsel %vm3647_vm12, %v6016_v58, %v6025_v44  ;;  %v3656_v4 = vsel %vm3647_vm12, %v6025_v44, %v6026_v36  ;;  %v3657_v57 = vsel %vm3647_vm12, %v6026_v36, %v3646_v32  ;;  %v7429_v44 = vld [vmem:[%s7711_s4 + $0x28] sm:$0xff] }
 0x27a   :  { %v4164_v39 = vsel %vm4163_vm14, %v6045_v3, %v6046_v33 }
 0x27b   :  { %5618 = vmatmul.msk.f32.vlgmr.msrb.gmra.mxu3 %vm93_vm1, %v7231_v1 }
 0x27c   :  { %5619 = vmatmul.msk.f32.vlgmr.msra.gmra.mxu0 %vm93_vm1, %v7231_v1  ;;  %3746 = vmatpush.msrb.mxu3 %v3651_v26 }
 0x27d   :  { %5620 = vmatmul.msk.f32.vlgmr.msra.gmra.mxu1 %vm93_vm1, %v7231_v1  ;;  %3766 = vmatpush.msra.mxu0 %v3652_v18 }
 0x27e   :  { %3786 = vmatpush.msra.mxu1 %v3653_v19  ;;  %v6029_v5 = vpop.permute.xlu0 %6028  ;;  %v6034_v8 = vpop.permute.xlu1 %6033 }
 0x27f   :  { %v6036_v12 = vunpack.i.h.bf16 %v6034_v8  ;;  %v6035_v54 = vunpack.i.l.bf16 %v6034_v8  ;;  %5630 = vmatmul.msk.f32.vlgmr.msra.gmra.mxu2 %vm93_vm1, %v7300_v45  ;;  %v6031_v53 = vunpack.i.h.bf16 %v6029_v5  ;;  %v6030_v37 = vunpack.i.l.bf16 %v6029_v5  ;;  %v7347_v51 = vpop.permute.xlu2 %6063 }
 0x280   :  { %v6066_v42 = vunpack.i.h.bf16 %v7347_v51  ;;  %v6065_v20 = vunpack.i.l.bf16 %v7347_v51 }
 0x281   :  { %v3910_v28 = vsel %vm3905_vm13, %v6035_v54, %v6036_v12  ;;  %v3907_v11 = vsel %vm3905_vm13, %v6021_v17, %v6030_v37  ;;  %v3908_v0 = vsel %vm3905_vm13, %v6030_v37, %v6031_v53  ;;  %v3909_v56 = vsel %vm3905_vm13, %v6031_v53, %v6035_v54 }
 0x282   :  { %4024 = vmatpush.msra.mxu2 %v3910_v28  ;;  %v3911_v49 = vsel %vm3905_vm13, %v6036_v12, %v6040_v21  ;;  %v4170_v58 = vsel %vm4163_vm14, %v6065_v20, %v6066_v42 }
 0x283   :  { %5622 = vmatmul.msk.f32.vlgmr.msra.gmra.mxu3 %vm93_vm1, %v7231_v1 }
 0x284   :  { %5624 = vmatmul.msk.f32.vlgmr.msrb.gmra.mxu0 %vm93_vm1, %v7300_v45  ;;  %3826 = vmatpush.msra.mxu3 %v3655_v55 }
 0x285   :  { %5625 = vmatmul.msk.f32.vlgmr.msrb.gmra.mxu1 %vm93_vm1, %v7300_v45  ;;  %3846 = vmatpush.msrb.mxu0 %v3656_v4 }
 0x286   :  { %3866 = vmatpush.msrb.mxu1 %v3657_v57  ;;  %v6049_v15 = vpop.permute.xlu0 %6048  ;;  %v3904_v16 = vpop.permute.xlu1 %3903 }
 0x287   :  { %v6051_v52 = vunpack.i.h.bf16 %v6049_v15  ;;  %v6050_v2 = vunpack.i.l.bf16 %v6049_v15  ;;  %5635 = vmatmul.msk.f32.vlgmr.msrb.gmra.mxu2 %vm93_vm1, %v7333_v34  ;;  %v7372_v35 = vpop.permute.xlu2 %6068 }
 0x288   :  { %v6071_v41 = vunpack.i.h.bf16 %v7372_v35  ;;  %v6070_v60 = vunpack.i.l.bf16 %v7372_v35 }
 0x289   :  { %v3914_v9 = vsel %vm3905_vm13, %v6050_v2, %v6051_v52  ;;  %v3913_v27 = vsel %vm3905_vm13, %v6041_v7, %v6050_v2  ;;  %v3915_v40 = vsel %vm3905_vm13, %v6051_v52, %v3904_v16 }
 0x28a   :  { %4104 = vmatpush.msrb.mxu2 %v3914_v9  ;;  %v4422_v48 = vsel %vm4421_vm15, %v6070_v60, %v6071_v41 }
 0x28b   :  { %5627 = vmatmul.msk.f32.vlgmr.msrb.gmra.mxu3 %vm93_vm1, %v7300_v45 }
 0x28c   :  { %5628 = vmatmul.msk.f32.vlgmr.msra.gmra.mxu0 %vm93_vm1, %v7300_v45  ;;  %3964 = vmatpush.msrb.mxu3 %v3907_v11 }
 0x28d   :  { %5629 = vmatmul.msk.f32.vlgmr.msra.gmra.mxu1 %vm93_vm1, %v7300_v45  ;;  %3984 = vmatpush.msra.mxu0 %v3908_v0 }
 0x28e   :  { %4004 = vmatpush.msra.mxu1 %v3909_v56  ;;  %v6054_v1 = vpop.permute.xlu0 %6053  ;;  %v6059_v50 = vpop.permute.xlu1 %6058 }
 0x28f   :  { %v6056_v6 = vunpack.i.h.bf16 %v6054_v1  ;;  %v6055_v38 = vunpack.i.l.bf16 %v6054_v1  ;;  %5639 = vmatmul.msk.f32.vlgmr.msra.gmra.mxu2 %vm93_vm1, %v7333_v34  ;;  %v6061_v23 = vunpack.i.h.bf16 %v6059_v50  ;;  %v6060_v59 = vunpack.i.l.bf16 %v6059_v50  ;;  %v7395_v61 = vpop.permute.xlu2 %6088 }
 0x290   :  { %v6091_v37 = vunpack.i.h.bf16 %v7395_v61  ;;  %v6090_v9 = vunpack.i.l.bf16 %v7395_v61 }
 0x291   :  { %v4166_v25 = vsel %vm4163_vm14, %v6055_v38, %v6056_v6  ;;  %v4165_v62 = vsel %vm4163_vm14, %v6046_v33, %v6055_v38  ;;  %v4167_v31 = vsel %vm4163_vm14, %v6056_v6, %v6060_v59  ;;  %v4168_v32 = vsel %vm4163_vm14, %v6060_v59, %v6061_v23  ;;  %v7492_v33 = vld [vmem:[%s7711_s4 + $0x30] sm:$0xff] }
 0x292   :  { %4242 = vmatpush.msra.mxu2 %v4166_v25  ;;  %v4169_v46 = vsel %vm4163_vm14, %v6061_v23, %v6065_v20  ;;  %v4428_v51 = vsel %vm4421_vm15, %v6090_v9, %v6091_v37 }
 0x293   :  { %5631 = vmatmul.msk.f32.vlgmr.msra.gmra.mxu3 %vm93_vm1, %v7300_v45 }
 0x294   :  { %5632 = vmatmul.msk.f32.vlgmr.msrb.gmra.mxu0 %vm93_vm1, %v7300_v45  ;;  %4044 = vmatpush.msra.mxu3 %v3911_v49 }
 0x295   :  { %5633 = vmatmul.msk.f32.vlgmr.msrb.gmra.mxu1 %vm93_vm1, %v7300_v45  ;;  %4064 = vmatpush.msrb.mxu0 %v3912_v22 }
 0x296   :  { %4084 = vmatpush.msrb.mxu1 %v3913_v27  ;;  %v6074_v43 = vpop.permute.xlu0 %6073  ;;  %v4162_v24 = vpop.permute.xlu1 %4161 }
 0x297   :  { %5643 = vmatmul.msk.f32.vlgmr.msrb.gmra.mxu2 %vm93_vm1, %v7333_v34  ;;  %v6076_v47 = vunpack.i.h.bf16 %v6074_v43  ;;  %v6075_v13 = vunpack.i.l.bf16 %v6074_v43  ;;  %v6094_v36 = vpop.permute.xlu2 %6093 }
 0x298   :  { %4322 = vmatpush.msrb.mxu2 %v4170_v58  ;;  %v6096_v7 = vunpack.i.h.bf16 %v6094_v36  ;;  %v6095_v21 = vunpack.i.l.bf16 %v6094_v36 }
 0x299   :  { %v4171_v8 = vsel %vm4163_vm14, %v6066_v42, %v6075_v13  ;;  %v4172_v12 = vsel %vm4163_vm14, %v6075_v13, %v6076_v47  ;;  %v4173_v54 = vsel %vm4163_vm14, %v6076_v47, %v4162_v24 }
 0x29a   :  { %v4680_v27 = vsel %vm4679_vm0, %v6095_v21, %v6096_v7 }
 0x29b   :  { %5636 = vmatmul.msk.f32.vlgmr.msrb.gmra.mxu3 %vm93_vm1, %v7333_v34 }
 0x29c   :  { %5637 = vmatmul.msk.f32.vlgmr.msra.gmra.mxu0 %vm93_vm1, %v7333_v34  ;;  %4124 = vmatpush.msrb.mxu3 %v3915_v40 }
 0x29d   :  { %5638 = vmatmul.msk.f32.vlgmr.msra.gmra.mxu1 %vm93_vm1, %v7333_v34  ;;  %4202 = vmatpush.msra.mxu0 %v4164_v39 }
 0x29e   :  { %4222 = vmatpush.msra.mxu1 %v4165_v62  ;;  %v6079_v30 = vpop.permute.xlu0 %6078  ;;  %v7393_v17 = vpop.permute.xlu1 %6083 }
 0x29f   :  { %5648 = vmatmul.msk.f32.vlgmr.msra.gmra.mxu2 %vm93_vm1, %v7388_v10  ;;  %v6086_v63 = vunpack.i.h.bf16 %v7393_v17  ;;  %v6085_v45 = vunpack.i.l.bf16 %v7393_v17  ;;  %v6081_v28 = vunpack.i.h.bf16 %v6079_v30  ;;  %v6080_v55 = vunpack.i.l.bf16 %v6079_v30  ;;  %v7449_v53 = vpop.permute.xlu2 %6113 }
 0x2a0   :  { %4460 = vmatpush.msra.mxu2 %v4422_v48  ;;  %v6116_v56 = vunpack.i.h.bf16 %v7449_v53  ;;  %v6115_v1 = vunpack.i.l.bf16 %v7449_v53 }
 0x2a1   :  { %v4426_v26 = vsel %vm4421_vm15, %v6085_v45, %v6086_v63  ;;  %v4423_v15 = vsel %vm4421_vm15, %v6071_v41, %v6080_v55  ;;  %v4424_v16 = vsel %vm4421_vm15, %v6080_v55, %v6081_v28  ;;  %v4425_v2 = vsel %vm4421_vm15, %v6081_v28, %v6085_v45 }
 0x2a2   :  { %v4427_v50 = vsel %vm4421_vm15, %v6086_v63, %v6090_v9  ;;  %v4686_v25 = vsel %vm4679_vm0, %v6115_v1, %v6116_v56 }
 0x2a3   :  { %5640 = vmatmul.msk.f32.vlgmr.msra.gmra.mxu3 %vm93_vm1, %v7333_v34 }
 0x2a4   :  { %5641 = vmatmul.msk.f32.vlgmr.msrb.gmra.mxu0 %vm93_vm1, %v7333_v34  ;;  %4262 = vmatpush.msra.mxu3 %v4167_v31 }
 0x2a5   :  { %5642 = vmatmul.msk.f32.vlgmr.msrb.gmra.mxu1 %vm93_vm1, %v7333_v34  ;;  %4282 = vmatpush.msrb.mxu0 %v4168_v32 }
 0x2a6   :  { %4302 = vmatpush.msrb.mxu1 %v4169_v46  ;;  %v7408_v14 = vpop.permute.xlu0 %6098  ;;  %v4420_v18 = vpop.permute.xlu1 %4419 }
 0x2a7   :  { %5652 = vmatmul.msk.f32.vlgmr.msrb.gmra.mxu2 %vm93_vm1, %v7388_v10  ;;  %v6101_v19 = vunpack.i.h.bf16 %v7408_v14  ;;  %v6100_v5 = vunpack.i.l.bf16 %v7408_v14  ;;  %v7474_v42 = vpop.permute.xlu2 %6118  ;;  %v7543_v14 = vld [vmem:[%s7711_s4 + $0x38] sm:$0xff] }
 0x2a8   :  { %4540 = vmatpush.msrb.mxu2 %v4426_v26  ;;  %v6121_v49 = vunpack.i.h.bf16 %v7474_v42  ;;  %v6120_v22 = vunpack.i.l.bf16 %v7474_v42 }
 0x2a9   :  { %v4430_v4 = vsel %vm4421_vm15, %v6100_v5, %v6101_v19  ;;  %v4429_v6 = vsel %vm4421_vm15, %v6091_v37, %v6100_v5  ;;  %v4431_v20 = vsel %vm4421_vm15, %v6101_v19, %v4420_v18 }
 0x2aa   :  { %v4938_v35 = vsel %vm4937_vm2, %v6120_v22, %v6121_v49 }
 0x2ab   :  { %5644 = vmatmul.msk.f32.vlgmr.msrb.gmra.mxu3 %vm93_vm1, %v7333_v34 }
 0x2ac   :  { %5646 = vmatmul.msk.f32.vlgmr.msra.gmra.mxu0 %vm93_vm1, %v7388_v10  ;;  %4342 = vmatpush.msrb.mxu3 %v4171_v8 }
 0x2ad   :  { %5647 = vmatmul.msk.f32.vlgmr.msra.gmra.mxu1 %vm93_vm1, %v7388_v10  ;;  %4362 = vmatpush.msra.mxu0 %v4172_v12 }
 0x2ae   :  { %4382 = vmatpush.msra.mxu1 %v4173_v54  ;;  %v7434_v57 = vpop.permute.xlu0 %6103  ;;  %v7446_v52 = vpop.permute.xlu1 %6108 }
 0x2af   :  { %5657 = vmatmul.msk.f32.vlgmr.msra.gmra.mxu2 %vm93_vm1, %v7429_v44  ;;  %v6106_v29 = vunpack.i.h.bf16 %v7434_v57  ;;  %v6105_v34 = vunpack.i.l.bf16 %v7434_v57  ;;  %v6111_v3 = vunpack.i.h.bf16 %v7446_v52  ;;  %v6110_v58 = vunpack.i.l.bf16 %v7446_v52  ;;  %v7505_v41 = vpop.permute.xlu2 %6138 }
 0x2b0   :  { %4620 = vmatpush.msra.mxu2 %v4430_v4  ;;  %v6141_v4 = vunpack.i.h.bf16 %v7505_v41  ;;  %v6140_v57 = vunpack.i.l.bf16 %v7505_v41 }
 0x2b1   :  { %v4682_v11 = vsel %vm4679_vm0, %v6105_v34, %v6106_v29  ;;  %v4681_v24 = vsel %vm4679_vm0, %v6096_v7, %v6105_v34  ;;  %v4683_v62 = vsel %vm4679_vm0, %v6106_v29, %v6110_v58  ;;  %v4685_v30 = vsel %vm4679_vm0, %v6111_v3, %v6115_v1 }
 0x2b3   :  { %5649 = vmatmul.msk.f32.vlgmr.msra.gmra.mxu3 %vm93_vm1, %v7388_v10 }
 0x2b4   :  { %5650 = vmatmul.msk.f32.vlgmr.msrb.gmra.mxu0 %vm93_vm1, %v7388_v10  ;;  %4480 = vmatpush.msra.mxu3 %v4423_v15 }
 0x2b5   :  { %5651 = vmatmul.msk.f32.vlgmr.msrb.gmra.mxu1 %vm93_vm1, %v7388_v10  ;;  %4500 = vmatpush.msrb.mxu0 %v4424_v16 }
 0x2b6   :  { %4520 = vmatpush.msrb.mxu1 %v4425_v2  ;;  %v7458_v0 = vpop.permute.xlu0 %6123  ;;  %v4678_v38 = vpop.permute.xlu1 %4677 }
 0x2b7   :  { %5661 = vmatmul.msk.f32.vlgmr.msrb.gmra.mxu2 %vm93_vm1, %v7429_v44  ;;  %v6126_v59 = vunpack.i.h.bf16 %v7458_v0  ;;  %v6125_v48 = vunpack.i.l.bf16 %v7458_v0  ;;  %v7545_v47 = vpop.permute.xlu2 %6143  ;;  %v4944_v0 = vsel %vm4937_vm2, %v6140_v57, %v6141_v4 }
 0x2b8   :  { %4758 = vmatpush.msrb.mxu2 %v4682_v11 }
 0x2b9   :  { %v4687_v31 = vsel %vm4679_vm0, %v6116_v56, %v6125_v48  ;;  %v4688_v32 = vsel %vm4679_vm0, %v6125_v48, %v6126_v59  ;;  %v4689_v46 = vsel %vm4679_vm0, %v6126_v59, %v4678_v38  ;;  %v5429_v48 = vld [vmem:[%s7712_s5] sm:$0xff]  ;;  %s6219_s5 = smov [#allocation3]  }
 0x2ba   :  { %5432 = vperm.xlu2 %6172, %v5429_v48   ;;  %s5460_s29 = sshll.u32 %s6219_s5, 4  ;;  %s5461_s29 = int_to_ptr.vmem [resolvable:$true] %s5460_s29 }
 0x2bb   :  { %5653 = vmatmul.msk.f32.vlgmr.msrb.gmra.mxu3 %vm93_vm1, %v7388_v10 }
 0x2bc   :  { %5654 = vmatmul.msk.f32.vlgmr.msra.gmra.mxu0 %vm93_vm1, %v7388_v10  ;;  %4560 = vmatpush.msrb.mxu3 %v4427_v50  ;;  %v6146_v50 = vunpack.i.h.bf16 %v7545_v47 }
 0x2bd   :  { %5655 = vmatmul.msk.f32.vlgmr.msra.gmra.mxu1 %vm93_vm1, %v7388_v10  ;;  %4580 = vmatpush.msra.mxu0 %v4428_v51  ;;  %v4684_v10 = vsel %vm4679_vm0, %v6110_v58, %v6111_v3  ;;  %v6145_v51 = vunpack.i.l.bf16 %v7545_v47 }
 0x2be   :  { %4600 = vmatpush.msra.mxu1 %v4429_v6  ;;  %v7486_v43 = vpop.permute.xlu0 %6128  ;;  %v7501_v40 = vpop.permute.xlu1 %6133 }
 0x2bf   :  { %5665 = vmatmul.msk.f32.vlgmr.msra.gmra.mxu2 %vm93_vm1, %v7429_v44  ;;  %v6136_v60 = vunpack.i.h.bf16 %v7501_v40  ;;  %v6135_v39 = vunpack.i.l.bf16 %v7501_v40  ;;  %v6131_v13 = vunpack.i.h.bf16 %v7486_v43  ;;  %v6130_v26 = vunpack.i.l.bf16 %v7486_v43 }
 0x2c0   :  { %4838 = vmatpush.msra.mxu2 %v4686_v25  ;;  %v7575_v29 = vpop.permute.xlu2 %6163 }
 0x2c1   :  { %v4942_v17 = vsel %vm4937_vm2, %v6135_v39, %v6136_v60  ;;  %v4940_v28 = vsel %vm4937_vm2, %v6130_v26, %v6131_v13  ;;  %v4941_v55 = vsel %vm4937_vm2, %v6131_v13, %v6135_v39  ;;  %v6166_v37 = vunpack.i.h.bf16 %v7575_v29 }
 0x2c2   :  { %v6165_v9 = vunpack.i.l.bf16 %v7575_v29  ;;  %v4943_v11 = vsel %vm4937_vm2, %v6136_v60, %v6140_v57 }
 0x2c3   :  { %5658 = vmatmul.msk.f32.vlgmr.msra.gmra.mxu3 %vm93_vm1, %v7429_v44 }
 0x2c4   :  { %5659 = vmatmul.msk.f32.vlgmr.msrb.gmra.mxu0 %vm93_vm1, %v7429_v44  ;;  %4640 = vmatpush.msra.mxu3 %v4431_v20  ;;  %v5202_v6 = vsel %vm5195_vm3, %v6165_v9, %v6166_v37 }
 0x2c5   :  { %5660 = vmatmul.msk.f32.vlgmr.msrb.gmra.mxu1 %vm93_vm1, %v7429_v44  ;;  %4718 = vmatpush.msrb.mxu0 %v4680_v27  ;;  %v7624_v27 = vld [vmem:[%s7711_s4 + $0x40] sm:$0xff] }
 0x2c6   :  { %4738 = vmatpush.msrb.mxu1 %v4681_v24  ;;  %v7518_v23 = vpop.permute.xlu0 %6148  ;;  %v4936_v34 = vpop.permute.xlu1 %4935 }
 0x2c7   :  { %5670 = vmatmul.msk.f32.vlgmr.msrb.gmra.mxu2 %vm93_vm1, %v7492_v33  ;;  %v6151_v63 = vunpack.i.h.bf16 %v7518_v23  ;;  %v6150_v45 = vunpack.i.l.bf16 %v7518_v23 }
 0x2c8   :  { %4976 = vmatpush.msrb.mxu2 %v4938_v35 }
 0x2c9   :  { %v4946_v18 = vsel %vm4937_vm2, %v6150_v45, %v6151_v63  ;;  %v4945_v56 = vsel %vm4937_vm2, %v6141_v4, %v6150_v45  ;;  %v4947_v20 = vsel %vm4937_vm2, %v6151_v63, %v4936_v34 }
 0x2cb   :  { %5662 = vmatmul.msk.f32.vlgmr.msrb.gmra.mxu3 %vm93_vm1, %v7429_v44 }
 0x2cc   :  { %5663 = vmatmul.msk.f32.vlgmr.msra.gmra.mxu0 %vm93_vm1, %v7429_v44  ;;  %4778 = vmatpush.msrb.mxu3 %v4683_v62 }
 0x2cd   :  { %5664 = vmatmul.msk.f32.vlgmr.msra.gmra.mxu1 %vm93_vm1, %v7429_v44  ;;  %4798 = vmatpush.msra.mxu0 %v4684_v10 }
 0x2ce   :  { %4818 = vmatpush.msra.mxu1 %v4685_v30  ;;  %v7556_v8 = vpop.permute.xlu0 %6153  ;;  %v6159_v25 = vpop.permute.xlu1 %6158 }
 0x2cf   :  { %5674 = vmatmul.msk.f32.vlgmr.msra.gmra.mxu2 %vm93_vm1, %v7492_v33  ;;  %v6156_v54 = vunpack.i.h.bf16 %v7556_v8  ;;  %v6155_v36 = vunpack.i.l.bf16 %v7556_v8  ;;  %v6161_v24 = vunpack.i.h.bf16 %v6159_v25 }
 0x2d0   :  { %v7527_v61 = vpop.f32.mrf.mxu2  ;;  %5056 = vmatpush.msra.mxu2 %v4942_v17 }
 0x2d1   :  { %v5198_v15 = vsel %vm5195_vm3, %v6155_v36, %v6156_v54  ;;  %v5197_v22 = vsel %vm5195_vm3, %v6146_v50, %v6155_v36  ;;  %v5201_v30 = vsel %vm5195_vm3, %v6161_v24, %v6165_v9 }
 0x2d3   :  { %5666 = vmatmul.msk.f32.vlgmr.msra.gmra.mxu3 %vm93_vm1, %v7429_v44  ;;  %v4939_v44 = vsel %vm4937_vm2, %v6121_v49, %v6130_v26  ;;  %v5196_v49 = vsel %vm5195_vm3, %v6145_v51, %v6146_v50 }
 0x2d4   :  { %5668 = vmatmul.msk.f32.vlgmr.msrb.gmra.mxu0 %vm93_vm1, %v7492_v33  ;;  %4858 = vmatpush.msra.mxu3 %v4687_v31 }
 0x2d5   :  { %5669 = vmatmul.msk.f32.vlgmr.msrb.gmra.mxu1 %vm93_vm1, %v7492_v33  ;;  %4878 = vmatpush.msrb.mxu0 %v4688_v32 }
 0x2d6   :  { %4898 = vmatpush.msrb.mxu1 %v4689_v46 }
 0x2d7   :  { %5679 = vmatmul.msk.f32.vlgmr.msrb.gmra.mxu2 %vm93_vm1, %v7543_v14  ;;  %v6169_v10 = vpop.permute.xlu1 %6168  ;;  %v5190_v17 = vpop.permute.xlu0 %5189 }
 0x2d8   :  { %v3237_v19 = vpop.f32.mrf.mxu0  ;;  %v7554_v5 = vpop.f32.mrf.mxu1  ;;  %5136 = vmatpush.msrb.mxu2 %v4946_v18  ;;  %v6171_v63 = vunpack.i.h.bf16 %v6169_v10  ;;  %v5203_v13 = vsel %vm5195_vm3, %v6166_v37, %v5190_v17 }
 0x2d9   :  { %v7558_v12 = vpop.f32.mrf.mxu2 }
 0x2db   :  { %5671 = vmatmul.msk.f32.vlgmr.msrb.gmra.mxu3 %vm93_vm1, %v7492_v33 }
 0x2dc   :  { %5672 = vmatmul.msk.f32.vlgmr.msra.gmra.mxu0 %vm93_vm1, %v7492_v33  ;;  %4996 = vmatpush.msrb.mxu3 %v4939_v44 }
 0x2dd   :  { %5673 = vmatmul.msk.f32.vlgmr.msra.gmra.mxu1 %vm93_vm1, %v7492_v33  ;;  %5016 = vmatpush.msra.mxu0 %v4940_v28 }
 0x2de   :  { %5036 = vmatpush.msra.mxu1 %v4941_v55 }
 0x2df   :  { %5683 = vmatmul.msk.f32.vlgmr.msra.gmra.mxu2 %vm93_vm1, %v7543_v14 }
 0x2e0   :  { %5274 = vmatpush.msra.mxu2 %v5198_v15 }
 0x2e1   :  { %v3317_v16 = vpop.f32.mrf.mxu0  ;;  %v7582_v52 = vpop.f32.mrf.mxu1 }
 0x2e2   :  { %v3440_v2 = vpop.f32.mrf.mxu2 }
 0x2e3   :  { %v7584_v53 = vadd.f32 %v3440_v2, %v3237_v19  ;;  %5675 = vmatmul.msk.f32.vlgmr.msra.gmra.mxu3 %vm93_vm1, %v7492_v33 }
 0x2e4   :  { %5676 = vmatmul.msk.f32.vlgmr.msrb.gmra.mxu0 %vm93_vm1, %v7492_v33  ;;  %5076 = vmatpush.msra.mxu3 %v4943_v11 }
 0x2e5   :  { %5677 = vmatmul.msk.f32.vlgmr.msrb.gmra.mxu1 %vm93_vm1, %v7492_v33  ;;  %5096 = vmatpush.msrb.mxu0 %v4944_v0  ;;  %v6160_v33 = vunpack.i.l.bf16 %v6159_v25 }
 0x2e6   :  { %5116 = vmatpush.msrb.mxu1 %v4945_v56  ;;  %v3297_v1 = vpop.f32.mrf.mxu3 }
 0x2e7   :  { %5687 = vmatmul.msk.f32.vlgmr.msrb.gmra.mxu2 %vm93_vm1, %v7543_v14  ;;  %v5199_v39 = vsel %vm5195_vm3, %v6156_v54, %v6160_v33  ;;  %v5200_v62 = vsel %vm5195_vm3, %v6160_v33, %v6161_v24 }
 0x2e8   :  { %5354 = vmatpush.msrb.mxu2 %v5202_v6 }
 0x2e9   :  { %v3397_v38 = vpop.f32.mrf.mxu0  ;;  %v7606_v7 = vpop.f32.mrf.mxu1 }
 0x2ea   :  { %v3520_v21 = vpop.f32.mrf.mxu2 }
 0x2eb   :  { %v7608_v42 = vadd.f32 %v3520_v21, %v3317_v16  ;;  %5680 = vmatmul.msk.f32.vlgmr.msrb.gmra.mxu3 %vm93_vm1, %v7543_v14 }
 0x2ec   :  { %5681 = vmatmul.msk.f32.vlgmr.msra.gmra.mxu0 %vm93_vm1, %v7543_v14  ;;  %5156 = vmatpush.msrb.mxu3 %v4947_v20 }
 0x2ed   :  { %5682 = vmatmul.msk.f32.vlgmr.msra.gmra.mxu1 %vm93_vm1, %v7543_v14  ;;  %5234 = vmatpush.msra.mxu0 %v5196_v49 }
 0x2ee   :  { %5254 = vmatpush.msra.mxu1 %v5197_v22  ;;  %v3377_v43 = vpop.f32.mrf.mxu3 }
 0x2ef   :  { %5692 = vmatmul.msk.f32.vlgmr.msra.gmra.mxu2 %vm93_vm1, %v7624_v27 }
 0x2f1   :  { %v3480_v3 = vpop.f32.mrf.mxu0 }
 0x2f2   :  { %v3500_v58 = vpop.f32.mrf.mxu1  ;;  %v3481_v35 = vadd.f32 %v3480_v3, %v7527_v61  ;;  %v3600_v41 = vpop.f32.mrf.mxu2  ;;  %v6170_v61 = vunpack.i.l.bf16 %v6169_v10 }
 0x2f3   :  { %v3501_v40 = vadd.f32 %v3500_v58, %v3297_v1  ;;  %5684 = vmatmul.msk.f32.vlgmr.msra.gmra.mxu3 %vm93_vm1, %v7543_v14  ;;  %v3601_v60 = vadd.f32 %v3600_v41, %v3397_v38 }
 0x2f4   :  { %5685 = vmatmul.msk.f32.vlgmr.msrb.gmra.mxu0 %vm93_vm1, %v7543_v14  ;;  %5294 = vmatpush.msra.mxu3 %v5199_v39  ;;  %v5204_v18 = vsel %vm5195_vm3, %v5190_v17, %v6170_v61  ;;  %v5205_v19 = vsel %vm5195_vm3, %v6170_v61, %v6171_v63 }
 0x2f5   :  { %5686 = vmatmul.msk.f32.vlgmr.msrb.gmra.mxu1 %vm93_vm1, %v7543_v14  ;;  %5314 = vmatpush.msrb.mxu0 %v5200_v62 }
 0x2f6   :  { %5334 = vmatpush.msrb.mxu1 %v5201_v30  ;;  %v3460_v23 = vpop.f32.mrf.mxu3 }
 0x2f7   :  { %v3461_v59 = vadd.f32 %v3460_v23, %v7554_v5  ;;  %5696 = vmatmul.msk.f32.vlgmr.msrb.gmra.mxu2 %vm93_vm1, %v7624_v27 }
 0x2f9   :  { %v3560_v45 = vpop.f32.mrf.mxu0 }
 0x2fa   :  { %v3580_v31 = vpop.f32.mrf.mxu1  ;;  %v3561_v32 = vadd.f32 %v3560_v45, %v7558_v12  ;;  %v3728_v47 = vpop.f32.mrf.mxu2 }
 0x2fb   :  { %v3581_v46 = vadd.f32 %v3580_v31, %v3377_v43  ;;  %5688 = vmatmul.msk.f32.vlgmr.msrb.gmra.mxu3 %vm93_vm1, %v7543_v14  ;;  %v3873_v26 = vadd.f32 %v3728_v47, %v3481_v35 }
 0x2fc   :  { %5690 = vmatmul.msk.f32.vlgmr.msra.gmra.mxu0 %vm93_vm1, %v7624_v27  ;;  %5374 = vmatpush.msrb.mxu3 %v5203_v13 }
 0x2fd   :  { %5691 = vmatmul.msk.f32.vlgmr.msra.gmra.mxu1 %vm93_vm1, %v7624_v27  ;;  %5394 = vmatpush.msra.mxu0 %v5204_v18 }
 0x2fe   :  { %5414 = vmatpush.msra.mxu1 %v5205_v19  ;;  %v3540_v5 = vpop.f32.mrf.mxu3 }
 0x2ff   :  { %v3541_v14 = vadd.f32 %v3540_v5, %v7582_v52 }
 0x301   :  { %v3688_v8 = vpop.f32.mrf.mxu0 }
 0x302   :  { %v3708_v12 = vpop.f32.mrf.mxu1  ;;  %v3871_v54 = vadd.f32 %v3688_v8, %v7584_v53  ;;  %v3808_v44 = vpop.f32.mrf.mxu2 }
 0x303   :  { %v3872_v36 = vadd.f32 %v3708_v12, %v3461_v59  ;;  %5693 = vmatmul.msk.f32.vlgmr.msra.gmra.mxu3 %vm93_vm1, %v7624_v27  ;;  %v3877_v28 = vadd.f32 %v3808_v44, %v3561_v32 }
 0x304   :  { %5694 = vmatmul.msk.f32.vlgmr.msrb.gmra.mxu0 %vm93_vm1, %v7624_v27 }
 0x305   :  { %5695 = vmatmul.msk.f32.vlgmr.msrb.gmra.mxu1 %vm93_vm1, %v7624_v27 }
 0x306   :  { %v3620_v55 = vpop.f32.mrf.mxu3 }
 0x307   :  { %v3621_v4 = vadd.f32 %v3620_v55, %v7606_v7 }
 0x309   :  { %v3768_v57 = vpop.f32.mrf.mxu0 }
 0x30a   :  { %v3788_v29 = vpop.f32.mrf.mxu1  ;;  %v3875_v34 = vadd.f32 %v3768_v57, %v7608_v42  ;;  %v3946_v16 = vpop.f32.mrf.mxu2 }
 0x30b   :  { %v3876_v15 = vadd.f32 %v3788_v29, %v3541_v14  ;;  %5697 = vmatmul.msk.f32.vlgmr.msrb.gmra.mxu3 %vm93_vm1, %v7624_v27  ;;  %v4129_v52 = vadd.f32 %v3946_v16, %v3871_v54 }
 0x30c   :  { %5698 = vmatmul.msk.f32.vlgmr.msra.gmra.mxu0 %vm93_vm1, %v7624_v27 }
 0x30d   :  { %5699 = vmatmul.msk.f32.vlgmr.msra.gmra.mxu1 %vm93_vm1, %v7624_v27 }
 0x30e   :  { %v3748_v2 = vpop.f32.mrf.mxu3 }
 0x30f   :  { %v3874_v53 = vadd.f32 %v3748_v2, %v3501_v40 }
 0x311   :  { %v3848_v37 = vpop.f32.mrf.mxu0 }
 0x312   :  { %v3868_v9 = vpop.f32.mrf.mxu1  ;;  %v3879_v11 = vadd.f32 %v3848_v37, %v3601_v60  ;;  %v4026_v56 = vpop.f32.mrf.mxu2 }
 0x313   :  { %v3880_v0 = vadd.f32 %v3868_v9, %v3621_v4  ;;  %v4133_v1 = vadd.f32 %v4026_v56, %v3875_v34 }
 0x316   :  { %v3828_v50 = vpop.f32.mrf.mxu3 }
 0x317   :  { %v3878_v51 = vadd.f32 %v3828_v50, %v3581_v46 }
 0x319   :  { %v3986_v6 = vpop.f32.mrf.mxu0 }
 0x31a   :  { %v4006_v38 = vpop.f32.mrf.mxu1  ;;  %v4131_v7 = vadd.f32 %v3986_v6, %v3873_v26  ;;  %v4106_v25 = vpop.f32.mrf.mxu2 }
 0x31b   :  { %v4132_v21 = vadd.f32 %v4006_v38, %v3874_v53  ;;  %v4137_v42 = vadd.f32 %v4106_v25, %v3879_v11 }
 0x31e   :  { %v3966_v20 = vpop.f32.mrf.mxu3 }
 0x31f   :  { %v4130_v49 = vadd.f32 %v3966_v20, %v3872_v36 }
 0x321   :  { %v4066_v22 = vpop.f32.mrf.mxu0 }
 0x322   :  { %v4086_v27 = vpop.f32.mrf.mxu1  ;;  %v4135_v43 = vadd.f32 %v4066_v22, %v3877_v28  ;;  %v4244_v33 = vpop.f32.mrf.mxu2 }
 0x323   :  { %v4136_v24 = vadd.f32 %v4086_v27, %v3878_v51  ;;  %v4389_v3 = vadd.f32 %v4244_v33, %v4131_v7 }
 0x326   :  { %v4046_v58 = vpop.f32.mrf.mxu3 }
 0x327   :  { %v4134_v35 = vadd.f32 %v4046_v58, %v3876_v15 }
 0x329   :  { %v4204_v40 = vpop.f32.mrf.mxu0 }
 0x32a   :  { %v4224_v41 = vpop.f32.mrf.mxu1  ;;  %v4387_v60 = vadd.f32 %v4204_v40, %v4129_v52  ;;  %v4324_v62 = vpop.f32.mrf.mxu2 }
 0x32b   :  { %v4388_v39 = vadd.f32 %v4224_v41, %v4130_v49  ;;  %v4393_v10 = vadd.f32 %v4324_v62, %v4135_v43  ;;  %v7686_v49 = vpop.permute.xlu2 %5432 }
 0x32e   :  { %v4126_v30 = vpop.f32.mrf.mxu3 }
 0x32f   :  { %v4138_v23 = vadd.f32 %v4126_v30, %v3880_v0 }
 0x331   :  { %v4284_v59 = vpop.f32.mrf.mxu0 }
 0x332   :  { %v4304_v48 = vpop.f32.mrf.mxu1  ;;  %v4391_v17 = vadd.f32 %v4284_v59, %v4133_v1  ;;  %v4462_v63 = vpop.f32.mrf.mxu2 }
 0x333   :  { %v4392_v61 = vadd.f32 %v4304_v48, %v4134_v35  ;;  %v4645_v45 = vadd.f32 %v4462_v63, %v4387_v60 }
 0x336   :  { %v4264_v31 = vpop.f32.mrf.mxu3 }
 0x337   :  { %v7674_v32 = vadd.f32 %v4264_v31, %v4132_v21 }
 0x339   :  { %v4364_v46 = vpop.f32.mrf.mxu0 }
 0x33a   :  { %v4384_v47 = vpop.f32.mrf.mxu1  ;;  %v4395_v13 = vadd.f32 %v4364_v46, %v4137_v42  ;;  %v4542_v18 = vpop.f32.mrf.mxu2 }
 0x33b   :  { %v7676_v26 = vadd.f32 %v4384_v47, %v4138_v23  ;;  %v4649_v19 = vadd.f32 %v4542_v18, %v4391_v17 }
 0x33e   :  { %v4344_v5 = vpop.f32.mrf.mxu3 }
 0x33f   :  { %v7678_v14 = vadd.f32 %v4344_v5, %v4136_v24 }
 0x341   :  { %v4502_v8 = vpop.f32.mrf.mxu0 }
 0x342   :  { %v4522_v12 = vpop.f32.mrf.mxu1  ;;  %v4622_v54 = vpop.f32.mrf.mxu2  ;;  %v4647_v6 = vadd.f32 %v4502_v8, %v4389_v3 }
 0x343   :  { %v7680_v36 = vadd.f32 %v4622_v54, %v4395_v13  ;;  %v4648_v5 = vadd.f32 %v4522_v12, %v7674_v32 }
 0x346   :  { %v4482_v44 = vpop.f32.mrf.mxu3 }
 0x347   :  { %v4646_v22 = vadd.f32 %v4482_v44, %v4388_v39 }
 0x349   :  { %v4582_v28 = vpop.f32.mrf.mxu0 }
 0x34a   :  { %v7682_v55 = vpop.f32.mrf.mxu1  ;;  %v4760_v4 = vpop.f32.mrf.mxu2  ;;  %v4651_v43 = vadd.f32 %v4582_v28, %v4393_v10 }
 0x34b   :  { %v4905_v7 = vadd.f32 %v4760_v4, %v4647_v6 }
 0x34e   :  { %v4562_v57 = vpop.f32.mrf.mxu3 }
 0x34f   :  { %v4650_v17 = vadd.f32 %v4562_v57, %v4392_v61 }
 0x351   :  { %v4720_v29 = vpop.f32.mrf.mxu0 }
 0x352   :  { %v4740_v34 = vpop.f32.mrf.mxu1  ;;  %v4840_v15 = vpop.f32.mrf.mxu2  ;;  %v4903_v24 = vadd.f32 %v4720_v29, %v4645_v45 }
 0x353   :  { %v4904_v33 = vadd.f32 %v4740_v34, %v4646_v22  ;;  %v4909_v40 = vadd.f32 %v4840_v15, %v4651_v43 }
 0x356   :  { %v4642_v16 = vpop.f32.mrf.mxu3 }
 0x357   :  { %v4654_v4 = vadd.f32 %v4642_v16, %v7676_v26 }
 0x359   :  { %v4800_v52 = vpop.f32.mrf.mxu0 }
 0x35a   :  { %v4820_v2 = vpop.f32.mrf.mxu1  ;;  %v4978_v53 = vpop.f32.mrf.mxu2  ;;  %v4907_v45 = vadd.f32 %v4800_v52, %v4649_v19 }
 0x35b   :  { %v5161_v41 = vadd.f32 %v4978_v53, %v4903_v24  ;;  %v4908_v31 = vadd.f32 %v4820_v2, %v4650_v17  ;;  %v4652_v53 = vadd.f32 %v7682_v55, %v7678_v14 }
 0x35e   :  { %v4780_v37 = vpop.f32.mrf.mxu3 }
 0x35f   :  { %v4906_v28 = vadd.f32 %v4780_v37, %v4648_v5 }
 0x361   :  { %v4880_v9 = vpop.f32.mrf.mxu0 }
 0x362   :  { %v4900_v11 = vpop.f32.mrf.mxu1  ;;  %v5058_v0 = vpop.f32.mrf.mxu2  ;;  %v4911_v34 = vadd.f32 %v4880_v9, %v7680_v36 }
 0x363   :  { %v5165_v13 = vadd.f32 %v5058_v0, %v4907_v45  ;;  %v4912_v15 = vadd.f32 %v4900_v11, %v4654_v4 }
 0x366   :  { %v7684_v56 = vpop.f32.mrf.mxu3 }
 0x369   :  { %v5018_v1 = vpop.f32.mrf.mxu0 }
 0x36a   :  { %v5038_v50 = vpop.f32.mrf.mxu1  ;;  %v5138_v51 = vpop.f32.mrf.mxu2  ;;  %v5163_v42 = vadd.f32 %v5018_v1, %v4905_v7 }
 0x36b   :  { %v5164_v29 = vadd.f32 %v5038_v50, %v4906_v28  ;;  %v5169_v32 = vadd.f32 %v5138_v51, %v4911_v34  ;;  %v4910_v50 = vadd.f32 %v7684_v56, %v4652_v53 }
 0x36e   :  { %v4998_v38 = vpop.f32.mrf.mxu3 }
 0x36f   :  { %v5162_v60 = vadd.f32 %v4998_v38, %v4904_v33 }
 0x371   :  { %v5098_v21 = vpop.f32.mrf.mxu0 }
 0x372   :  { %v5118_v25 = vpop.f32.mrf.mxu1  ;;  %v5276_v20 = vpop.f32.mrf.mxu2  ;;  %v5167_v30 = vadd.f32 %v5098_v21, %v4909_v40 }
 0x373   :  { %v5421_v27 = vadd.f32 %v5276_v20, %v5163_v42  ;;  %v5168_v11 = vadd.f32 %v5118_v25, %v4910_v50 }
 0x375   :  { %v5437_v58 = vadd.f32 %v7686_v49, %v5421_v27 }
 0x376   :  { %v5078_v35 = vpop.f32.mrf.mxu3 }
 0x377   :  { %5447 = vst [vmem:[#allocation3 + $0x10] sm:$0xff] %v5437_v58  ;;  %v5166_v18 = vadd.f32 %v5078_v35, %v4908_v31 }
 0x379   :  { %v5236_v3 = vpop.f32.mrf.mxu0 }
 0x37a   :  { %v5256_v62 = vpop.f32.mrf.mxu1  ;;  %v5419_v23 = vadd.f32 %v5236_v3, %v5161_v41  ;;  %v5356_v48 = vpop.f32.mrf.mxu2 }
 0x37b   :  { %v5420_v59 = vadd.f32 %v5256_v62, %v5162_v60  ;;  %v5425_v63 = vadd.f32 %v5356_v48, %v5167_v30 }
 0x37c   :  { %v5435_v39 = vadd.f32 %v7686_v49, %v5419_v23 }
 0x37d   :  { %v5436_v10 = vadd.f32 %v7686_v49, %v5420_v59  ;;  %v5441_v46 = vadd.f32 %v7686_v49, %v5425_v63 }
 0x37e   :  { %5445 = vst [vmem:[#allocation3] sm:$0xff] %v5435_v39  ;;  %v5158_v47 = vpop.f32.mrf.mxu3 }
 0x37f   :  { %5446 = vst [vmem:[#allocation3 + $0x8] sm:$0xff] %v5436_v10  ;;  %v5170_v12 = vadd.f32 %v5158_v47, %v4912_v15 }
 0x380   :  { %5451 = vst [vmem:[#allocation3 + $0x30] sm:$0xff] %v5441_v46 }
 0x381   :  { %v5316_v8 = vpop.f32.mrf.mxu0 }
 0x382   :  { %v5336_v54 = vpop.f32.mrf.mxu1  ;;  %v5423_v61 = vadd.f32 %v5316_v8, %v5165_v13 }
 0x383   :  { %v5424_v44 = vadd.f32 %v5336_v54, %v5166_v18 }
 0x384   :  { %v5439_v19 = vadd.f32 %v7686_v49, %v5423_v61 }
 0x385   :  { %v5440_v57 = vadd.f32 %v7686_v49, %v5424_v44 }
 0x386   :  { %5449 = vst [vmem:[#allocation3 + $0x20] sm:$0xff] %v5439_v19  ;;  %v5296_v52 = vpop.f32.mrf.mxu3 }
 0x387   :  { %5450 = vst [vmem:[#allocation3 + $0x28] sm:$0xff] %v5440_v57  ;;  %v5422_v2 = vadd.f32 %v5296_v52, %v5164_v29 }
 0x389   :  { %v5438_v37 = vadd.f32 %v7686_v49, %v5422_v2  ;;  %v5396_v26 = vpop.f32.mrf.mxu0 }
 0x38a   :  { %v5416_v16 = vpop.f32.mrf.mxu1  ;;  %v5427_v0 = vadd.f32 %v5396_v26, %v5169_v32 }
 0x38b   :  { %v5428_v1 = vadd.f32 %v5416_v16, %v5170_v12  ;;  %5448 = vst [vmem:[#allocation3 + $0x18] sm:$0xff] %v5438_v37 }
 0x38c   :  { %v5443_v36 = vadd.f32 %v7686_v49, %v5427_v0 }
 0x38d   :  { %v5444_v9 = vadd.f32 %v7686_v49, %v5428_v1 }
 0x38e   :  { %5453 = vst [vmem:[#allocation3 + $0x40] sm:$0xff] %v5443_v36  ;;  %v5376_v51 = vpop.f32.mrf.mxu3 }
 0x38f   :  { %5454 = vst [vmem:[#allocation3 + $0x48] sm:$0xff] %v5444_v9  ;;  %v5426_v14 = vadd.f32 %v5376_v51, %v5168_v11 }
 0x391   :  { %v5442_v55 = vadd.f32 %v7686_v49, %v5426_v14 }
 0x393   :  { %5452 = vst [vmem:[#allocation3 + $0x38] sm:$0xff] %v5442_v55 }
 0x394   :  { %5465 = dma.vmem_to_hbm [thread:$0]  %s5461_s29, 1280, %s5463_s7, [#allocation4]  }
 0x395   :  { %6197 = dma.done.wait [#allocation4], 1280  }
 0x396   :  { %6198 = vsyncadd [#allocation4], 4294966016 }
 0x397   :  { %5470 = vsyncpa [#allocation4], 1 }

</bundles_post_ra>
